<compile_context>
chip_gen: v7x
topology: tpu7x:2x2x1
jax: 0.10.0
libtpu: 0.0.40
codegen_flags: <defaults>
</compile_context>

<pallas_src>
import functools

import jax
import jax.numpy as jnp
from jax import lax
from jax.experimental import pallas as pl
from jax.experimental.pallas import tpu as pltpu


def _gelu_tanh(x):
    # tanh-approx GELU: the tanh runs on the EUP slot instead of putting a divide +
    # 5-term erf polynomial on the saturated VALU slot.  Max deviation from exact
    # erf-GELU is ~1e-3, far below this kernel's bf16-MXU noise floor.
    c = 0.7978845608028654  # sqrt(2/pi)
    return 0.5 * x * (1.0 + jnp.tanh(c * (x + 0.044715 * (x * x * x))))


def _feedforward_kernel(x_ref, w_in_ref, wpk_ref, w_out_ref, b_out_ref, o_ref,
                        *, H, W, hidden):
    """Fused project_in -> dwconv3x3 -> gelu-gate -> project_out for one image.

    Layout: channels on sublanes, flattened H*W tokens on lanes (lane-dense).
      x_ref     : (1, Cin, L)     bf16   L = H*W
      w_in_ref  : (C2, Cin)       bf16   C2 = 2*hidden
      wpk_ref   : (C2, 16)        f32    cols 0..8 = dw taps (3*i+j), 9 = b_in, 10 = b_dw
      w_out_ref : (Cout, hidden)  bf16
      b_out_ref : (Cout, 1)       f32
      o_ref     : (1, Cout, L)
    """
    L = H * W

    x = x_ref[0]                                   # (Cin, L) bf16
    wp = wpk_ref[...]                              # (C2, 16) f32

    # ---- project_in: 1x1 conv == channel matmul (MXU, bf16 in / f32 acc) --------
    h = jnp.dot(w_in_ref[...], x, preferred_element_type=jnp.float32) + wp[:, 9:10]

    # ---- depthwise 3x3, padding=1, in the flattened token domain ----------------
    # Shifts are XLU lane rotations (pltpu.roll).  The zero padding of the conv is
    # re-created with 2 column masks + 2 row masks, each applied once per tap group:
    #   out = sum_di rowmask(di) * roll( sum_dj w[di,dj] * colmasked_roll(h, dj), di*W )
    tok = lax.broadcasted_iota(jnp.int32, (1, L), 1)
    col = tok % W
    mask_l = (col > 0).astype(jnp.float32)         # column c-1 exists
    mask_r = (col < W - 1).astype(jnp.float32)     # column c+1 exists
    mask_t = (tok >= W).astype(jnp.float32)        # row r-1 exists
    mask_b = (tok < L - W).astype(jnp.float32)     # row r+1 exists

    h_l = pltpu.roll(h, 1, axis=1) * mask_l        # value at (r, c-1)
    h_r = pltpu.roll(h, L - 1, axis=1) * mask_r    # value at (r, c+1)

    def col_mix(t):                                # weighted sum over dj for one di
        return wp[:, t:t + 1] * h_l + wp[:, t + 1:t + 2] * h + wp[:, t + 2:t + 3] * h_r

    g_m1 = col_mix(0)                              # di = -1 taps (kernel row 0)
    g_0 = col_mix(3)                               # di =  0 taps (kernel row 1)
    g_p1 = col_mix(6)                              # di = +1 taps (kernel row 2)

    hd = (g_0 + wp[:, 10:11]
          + pltpu.roll(g_m1, W, axis=1) * mask_t       # pulls row r-1 under output row r
          + pltpu.roll(g_p1, L - W, axis=1) * mask_b)  # pulls row r+1 under output row r

    # ---- GELU gate (chunk along channels) + project_out, fused ------------------
    gate = _gelu_tanh(hd[:hidden, :]) * hd[hidden:, :]              # (hidden, L) f32
    out = jnp.dot(w_out_ref[...], gate.astype(jnp.bfloat16),
                  preferred_element_type=jnp.float32) + b_out_ref[...]
    o_ref[0] = out.astype(o_ref.dtype)
    # TODO(synk): on v6e/v7x the dwconv/gate math above could run in bf16 (2x VALU
    # throughput, half the intermediate VMEM); kept f32 so the identical kernel is also
    # optimal on v5e (no bf16 VPU) and does not rely on packed-dtype lane rotates.


def feedforward_forward(x_nchw, params):
    """Restormer FeedForward. x_nchw: (B, dim, H, W) -> same shape/dtype."""
    B, Cin, H, W = x_nchw.shape
    C2 = params["w_dw"].shape[0]              # 2 * hidden_features
    hidden = C2 // 2
    Cout = params["w_out"].shape[0]
    L = H * W

    # Free contiguous reshape NCHW -> (B, C, tokens); bf16 cast halves x DMA bytes
    # (the project_in MXU matmul consumes bf16 anyway).
    x3 = x_nchw.reshape(B, Cin, L).astype(jnp.bfloat16)

    w_in = params["w_in"].astype(jnp.bfloat16)                    # (C2, Cin)
    w_out = params["w_out"].astype(jnp.bfloat16)                  # (Cout, hidden)
    b_out = params["b_out"].reshape(Cout, 1).astype(jnp.float32)
    # Pack the 9 depthwise taps + b_in + b_dw into one lane-padded ref (cols 0..10).
    wpack = jnp.concatenate(
        [params["w_dw"].reshape(C2, 9),
         params["b_in"].reshape(C2, 1),
         params["b_dw"].reshape(C2, 1),
         jnp.zeros((C2, 5), params["w_dw"].dtype)], axis=1).astype(jnp.float32)

    kernel = functools.partial(_feedforward_kernel, H=H, W=W, hidden=hidden)

    # Explicit VMEM budget: double-buffered x/out blocks + persistent weights + ~10 live
    # (C2, L) f32 intermediates inside the body, with 2x headroom, clamped to [32, 64] MiB.
    est = (2 * (Cin * L * 2 + Cout * L * 4)
           + 2 * (C2 * Cin * 2 + Cout * hidden * 2 + C2 * 16 * 4 + Cout * 4)
           + 10 * C2 * L * 4)
    vmem_limit = int(min(64 * 1024 * 1024, max(32 * 1024 * 1024, 2 * est)))
    # TODO(synk): for large images (est approaching v7x's 64 MiB VMEM) switch to row
    # tiles with a 1-row halo per grid step (grid=(B, H//TH)) instead of whole images.

    out = pl.pallas_call(
        kernel,
        out_shape=jax.ShapeDtypeStruct((B, Cout, L), x_nchw.dtype),
        grid=(B,),
        in_specs=[
            pl.BlockSpec((1, Cin, L), lambda b: (b, 0, 0)),
            pl.BlockSpec((C2, Cin), lambda b: (0, 0)),
            pl.BlockSpec((C2, 16), lambda b: (0, 0)),
            pl.BlockSpec((Cout, hidden), lambda b: (0, 0)),
            pl.BlockSpec((Cout, 1), lambda b: (0, 0)),
        ],
        out_specs=pl.BlockSpec((1, Cout, L), lambda b: (b, 0, 0)),
        compiler_params=pltpu.CompilerParams(
            dimension_semantics=("parallel",),
            vmem_limit_bytes=vmem_limit),
        # TODO(synk): on v7x force the 2-TC split with pltpu.CORE_PARALLEL on the batch
        # (or row-tile) axis; plain "parallel" is not guaranteed to change codegen.
    )(x3, w_in, wpack, w_out, b_out)
    return out.reshape(B, Cout, H, W)


# -------------------------------------------------------------------- reference / params
def _reference_forward(x, p):
    """Pure-JAX (XLA) f32 reference of the PyTorch module, for correctness checking."""
    dn = ("NCHW", "OIHW", "NCHW")
    hp = lax.Precision.HIGHEST
    h = lax.conv_general_dilated(x, p["w_in"][:, :, None, None], (1, 1), "VALID",
                                 dimension_numbers=dn, precision=hp)
    h = h + p["b_in"][None, :, None, None]
    C2 = h.shape[1]
    hd = lax.conv_general_dilated(h, p["w_dw"][:, None, :, :], (1, 1),
                                  ((1, 1), (1, 1)), dimension_numbers=dn,
                                  feature_group_count=C2, precision=hp)
    hd = hd + p["b_dw"][None, :, None, None]
    x1, x2 = jnp.split(hd, 2, axis=1)
    g = jax.nn.gelu(x1, approximate=False) * x2
    out = lax.conv_general_dilated(g, p["w_out"][:, :, None, None], (1, 1), "VALID",
                                   dimension_numbers=dn, precision=hp)
    return out + p["b_out"][None, :, None, None]


def init_params(key, dim=16, ffn_expansion_factor=2.0):
    hidden = int(dim * ffn_expansion_factor)
    ks = jax.random.split(key, 6)
    s = 0.5
    f32 = jnp.float32
    return dict(
        w_in=s * jax.random.normal(ks[0], (2 * hidden, dim), f32),   # Conv2d(dim, 2h, 1)
        b_in=s * jax.random.normal(ks[1], (2 * hidden,), f32),
        w_dw=s * jax.random.normal(ks[2], (2 * hidden, 3, 3), f32),  # depthwise 3x3
        b_dw=s * jax.random.normal(ks[3], (2 * hidden,), f32),
        w_out=s * jax.random.normal(ks[4], (dim, hidden), f32),      # Conv2d(h, dim, 1)
        b_out=s * jax.random.normal(ks[5], (dim,), f32),
    )


if __name__ == "__main__":
    key = jax.random.PRNGKey(0)
    kx, kp = jax.random.split(key)
    dim, ffn_factor = 16, 2.0
    params = init_params(kp, dim=dim, ffn_expansion_factor=ffn_factor)
    x = jax.random.normal(kx, (2, dim, 16, 16), jnp.float32)   # NCHW, like PyTorch

    y = jax.jit(feedforward_forward)(x, params)
    jax.block_until_ready(y)
    assert y.shape == x.shape and y.dtype == x.dtype

    # Correctness vs f32 XLA reference (kernel uses bf16 MXU inputs + tanh GELU -> loose tol).
    y_ref = _reference_forward(x, params)
    rel = float(jnp.max(jnp.abs(y - y_ref)) / (jnp.max(jnp.abs(y_ref)) + 1e-6))
    assert rel < 5e-2, f"mismatch vs reference: max rel-to-max error {rel:.3e}"
    print("KERNEL_OK")
</pallas_src>

<mosaic_0001>
module attributes {stable_mosaic.version = 11 : i64} {
  func.func @_feedforward_kernel(%arg0: i32, %arg1: memref<1x16x256xbf16, #tpu.memory_space<vmem>>, %arg2: memref<64x16xbf16, #tpu.memory_space<vmem>>, %arg3: memref<64x16xf32, #tpu.memory_space<vmem>>, %arg4: memref<16x32xbf16, #tpu.memory_space<vmem>>, %arg5: memref<16x1xf32, #tpu.memory_space<vmem>>, %arg6: memref<1x16x256xf32, #tpu.memory_space<vmem>>) attributes {dimension_semantics = [#tpu.dimension_semantics<parallel>], iteration_bounds = array<i64: 2>, scalar_prefetch = 0 : i64, scratch_operands = 0 : i64, tpu.core_type = #tpu.core_type<tc>, window_params = [{transform_indices = @transform_0, window_bounds = array<i64: 1, 16, 256>}, {pipeline_mode = #tpu.pipeline_mode<synchronous>, transform_indices = @transform_1, window_bounds = array<i64: 64, 16>}, {pipeline_mode = #tpu.pipeline_mode<synchronous>, transform_indices = @transform_2, window_bounds = array<i64: 64, 16>}, {pipeline_mode = #tpu.pipeline_mode<synchronous>, transform_indices = @transform_3, window_bounds = array<i64: 16, 32>}, {pipeline_mode = #tpu.pipeline_mode<synchronous>, transform_indices = @transform_4, window_bounds = array<i64: 16, 1>}, {transform_indices = @transform_5, window_bounds = array<i64: 1, 16, 256>}]} {
    %c0 = arith.constant 0 : index
    %c0_0 = arith.constant 0 : index
    %c0_1 = arith.constant 0 : index
    %0 = vector.load %arg1[%c0, %c0_0, %c0_1] : memref<1x16x256xbf16, #tpu.memory_space<vmem>>, vector<1x16x256xbf16>
    %1 = vector.shape_cast %0 : vector<1x16x256xbf16> to vector<16x256xbf16>
    %c0_2 = arith.constant 0 : index
    %c0_3 = arith.constant 0 : index
    %2 = vector.load %arg3[%c0_2, %c0_3] : memref<64x16xf32, #tpu.memory_space<vmem>>, vector<64x16xf32>
    %c0_4 = arith.constant 0 : index
    %c0_5 = arith.constant 0 : index
    %3 = vector.load %arg2[%c0_4, %c0_5] : memref<64x16xbf16, #tpu.memory_space<vmem>>, vector<64x16xbf16>
    %cst = arith.constant dense<0.000000e+00> : vector<64x256xf32>
    %4 = tpu.matmul %3, %1, %cst {dimension_numbers = #tpu.dot_dimension_numbers<[1], [0], [0], [1], [0, 0, 1, 1], [], []>} : vector<64x16xbf16>, vector<16x256xbf16>, vector<64x256xf32> -> vector<64x256xf32>
    %5 = vector.extract_strided_slice %2 {offsets = [0, 9], sizes = [64, 1], strides = [1, 1]} : vector<64x16xf32> to vector<64x1xf32>
    %6 = vector.broadcast %5 : vector<64x1xf32> to vector<64x256xf32>
    %7 = arith.addf %4, %6 : vector<64x256xf32>
    %8 = tpu.iota {dimensions = array<i32: 1>} : vector<1x256xi32>
    %c16_i32 = arith.constant 16 : i32
    %c0_i32 = arith.constant 0 : i32
    %9 = arith.cmpi eq, %c16_i32, %c0_i32 : i32
    %c1_i32 = arith.constant 1 : i32
    %10 = arith.select %9, %c1_i32, %c16_i32 : i32
    %11 = vector.broadcast %10 : i32 to vector<1x256xi32>
    %12 = arith.remsi %8, %11 : vector<1x256xi32>
    %c0_i32_6 = arith.constant 0 : i32
    %13 = vector.broadcast %c0_i32_6 : i32 to vector<1x256xi32>
    %14 = arith.cmpi ne, %12, %13 : vector<1x256xi32>
    %c0_i32_7 = arith.constant 0 : i32
    %15 = vector.broadcast %c0_i32_7 : i32 to vector<1x256xi32>
    %16 = arith.cmpi slt, %12, %15 : vector<1x256xi32>
    %c0_i32_8 = arith.constant 0 : i32
    %17 = arith.cmpi slt, %10, %c0_i32_8 : i32
    %18 = vector.broadcast %17 : i1 to vector<1x256xi1>
    %19 = vector.broadcast %18 : vector<1x256xi1> to vector<1x256xi1>
    %20 = arith.xori %16, %19 : vector<1x256xi1>
    %21 = arith.andi %20, %14 : vector<1x256xi1>
    %22 = vector.broadcast %10 : i32 to vector<1x256xi32>
    %23 = arith.addi %12, %22 : vector<1x256xi32>
    %24 = arith.select %21, %23, %12 : vector<1x256xi1>, vector<1x256xi32>
    %c0_i32_9 = arith.constant 0 : i32
    %25 = vector.broadcast %c0_i32_9 : i32 to vector<1x256xi32>
    %26 = arith.cmpi sgt, %24, %25 : vector<1x256xi32>
    %27 = arith.extui %26 : vector<1x256xi1> to vector<1x256xi32>
    %28 = arith.sitofp %27 : vector<1x256xi32> to vector<1x256xf32>
    %c15_i32 = arith.constant 15 : i32
    %29 = vector.broadcast %c15_i32 : i32 to vector<1x256xi32>
    %30 = arith.cmpi slt, %24, %29 : vector<1x256xi32>
    %31 = arith.extui %30 : vector<1x256xi1> to vector<1x256xi32>
    %32 = arith.sitofp %31 : vector<1x256xi32> to vector<1x256xf32>
    %c16_i32_10 = arith.constant 16 : i32
    %33 = vector.broadcast %c16_i32_10 : i32 to vector<1x256xi32>
    %34 = arith.cmpi sge, %8, %33 : vector<1x256xi32>
    %35 = arith.extui %34 : vector<1x256xi1> to vector<1x256xi32>
    %36 = arith.sitofp %35 : vector<1x256xi32> to vector<1x256xf32>
    %c240_i32 = arith.constant 240 : i32
    %37 = vector.broadcast %c240_i32 : i32 to vector<1x256xi32>
    %38 = arith.cmpi slt, %8, %37 : vector<1x256xi32>
    %39 = arith.extui %38 : vector<1x256xi1> to vector<1x256xi32>
    %40 = arith.sitofp %39 : vector<1x256xi32> to vector<1x256xf32>
    %c1_i32_11 = arith.constant 1 : i32
    %41 = tpu.dynamic_rotate %7 by %c1_i32_11 dim 1 : vector<64x256xf32>, i32 -> vector<64x256xf32>
    %42 = vector.broadcast %28 : vector<1x256xf32> to vector<64x256xf32>
    %43 = arith.mulf %41, %42 : vector<64x256xf32>
    %c255_i32 = arith.constant 255 : i32
    %44 = tpu.dynamic_rotate %7 by %c255_i32 dim 1 : vector<64x256xf32>, i32 -> vector<64x256xf32>
    %45 = vector.broadcast %32 : vector<1x256xf32> to vector<64x256xf32>
    %46 = arith.mulf %44, %45 : vector<64x256xf32>
    %47 = vector.extract_strided_slice %2 {offsets = [0, 0], sizes = [64, 1], strides = [1, 1]} : vector<64x16xf32> to vector<64x1xf32>
    %48 = vector.broadcast %47 : vector<64x1xf32> to vector<64x256xf32>
    %49 = arith.mulf %48, %43 : vector<64x256xf32>
    %50 = vector.extract_strided_slice %2 {offsets = [0, 1], sizes = [64, 1], strides = [1, 1]} : vector<64x16xf32> to vector<64x1xf32>
    %51 = vector.broadcast %50 : vector<64x1xf32> to vector<64x256xf32>
    %52 = arith.mulf %51, %7 : vector<64x256xf32>
    %53 = arith.addf %49, %52 : vector<64x256xf32>
    %54 = vector.extract_strided_slice %2 {offsets = [0, 2], sizes = [64, 1], strides = [1, 1]} : vector<64x16xf32> to vector<64x1xf32>
    %55 = vector.broadcast %54 : vector<64x1xf32> to vector<64x256xf32>
    %56 = arith.mulf %55, %46 : vector<64x256xf32>
    %57 = arith.addf %53, %56 : vector<64x256xf32>
    %58 = vector.extract_strided_slice %2 {offsets = [0, 3], sizes = [64, 1], strides = [1, 1]} : vector<64x16xf32> to vector<64x1xf32>
    %59 = vector.broadcast %58 : vector<64x1xf32> to vector<64x256xf32>
    %60 = arith.mulf %59, %43 : vector<64x256xf32>
    %61 = vector.extract_strided_slice %2 {offsets = [0, 4], sizes = [64, 1], strides = [1, 1]} : vector<64x16xf32> to vector<64x1xf32>
    %62 = vector.broadcast %61 : vector<64x1xf32> to vector<64x256xf32>
    %63 = arith.mulf %62, %7 : vector<64x256xf32>
    %64 = arith.addf %60, %63 : vector<64x256xf32>
    %65 = vector.extract_strided_slice %2 {offsets = [0, 5], sizes = [64, 1], strides = [1, 1]} : vector<64x16xf32> to vector<64x1xf32>
    %66 = vector.broadcast %65 : vector<64x1xf32> to vector<64x256xf32>
    %67 = arith.mulf %66, %46 : vector<64x256xf32>
    %68 = arith.addf %64, %67 : vector<64x256xf32>
    %69 = vector.extract_strided_slice %2 {offsets = [0, 6], sizes = [64, 1], strides = [1, 1]} : vector<64x16xf32> to vector<64x1xf32>
    %70 = vector.broadcast %69 : vector<64x1xf32> to vector<64x256xf32>
    %71 = arith.mulf %70, %43 : vector<64x256xf32>
    %72 = vector.extract_strided_slice %2 {offsets = [0, 7], sizes = [64, 1], strides = [1, 1]} : vector<64x16xf32> to vector<64x1xf32>
    %73 = vector.broadcast %72 : vector<64x1xf32> to vector<64x256xf32>
    %74 = arith.mulf %73, %7 : vector<64x256xf32>
    %75 = arith.addf %71, %74 : vector<64x256xf32>
    %76 = vector.extract_strided_slice %2 {offsets = [0, 8], sizes = [64, 1], strides = [1, 1]} : vector<64x16xf32> to vector<64x1xf32>
    %77 = vector.broadcast %76 : vector<64x1xf32> to vector<64x256xf32>
    %78 = arith.mulf %77, %46 : vector<64x256xf32>
    %79 = arith.addf %75, %78 : vector<64x256xf32>
    %80 = vector.extract_strided_slice %2 {offsets = [0, 10], sizes = [64, 1], strides = [1, 1]} : vector<64x16xf32> to vector<64x1xf32>
    %81 = vector.broadcast %80 : vector<64x1xf32> to vector<64x256xf32>
    %82 = arith.addf %68, %81 : vector<64x256xf32>
    %c16_i32_12 = arith.constant 16 : i32
    %83 = tpu.dynamic_rotate %57 by %c16_i32_12 dim 1 : vector<64x256xf32>, i32 -> vector<64x256xf32>
    %84 = vector.broadcast %36 : vector<1x256xf32> to vector<64x256xf32>
    %85 = arith.mulf %83, %84 : vector<64x256xf32>
    %86 = arith.addf %82, %85 : vector<64x256xf32>
    %c240_i32_13 = arith.constant 240 : i32
    %87 = tpu.dynamic_rotate %79 by %c240_i32_13 dim 1 : vector<64x256xf32>, i32 -> vector<64x256xf32>
    %88 = vector.broadcast %40 : vector<1x256xf32> to vector<64x256xf32>
    %89 = arith.mulf %87, %88 : vector<64x256xf32>
    %90 = arith.addf %86, %89 : vector<64x256xf32>
    %91 = vector.extract_strided_slice %90 {offsets = [0, 0], sizes = [32, 256], strides = [1, 1]} : vector<64x256xf32> to vector<32x256xf32>
    %cst_14 = arith.constant 5.000000e-01 : f32
    %92 = vector.broadcast %cst_14 : f32 to vector<32x256xf32>
    %93 = arith.mulf %92, %91 : vector<32x256xf32>
    %94 = arith.mulf %91, %91 : vector<32x256xf32>
    %95 = arith.mulf %94, %91 : vector<32x256xf32>
    %cst_15 = arith.constant 4.471500e-02 : f32
    %96 = vector.broadcast %cst_15 : f32 to vector<32x256xf32>
    %97 = arith.mulf %96, %95 : vector<32x256xf32>
    %98 = arith.addf %91, %97 : vector<32x256xf32>
    %cst_16 = arith.constant 0.797884583 : f32
    %99 = vector.broadcast %cst_16 : f32 to vector<32x256xf32>
    %100 = arith.mulf %99, %98 : vector<32x256xf32>
    %101 = math.tanh %100 : vector<32x256xf32>
    %cst_17 = arith.constant 1.000000e+00 : f32
    %102 = vector.broadcast %cst_17 : f32 to vector<32x256xf32>
    %103 = arith.addf %102, %101 : vector<32x256xf32>
    %104 = arith.mulf %93, %103 : vector<32x256xf32>
    %105 = vector.extract_strided_slice %90 {offsets = [32, 0], sizes = [32, 256], strides = [1, 1]} : vector<64x256xf32> to vector<32x256xf32>
    %106 = arith.mulf %104, %105 : vector<32x256xf32>
    %c0_18 = arith.constant 0 : index
    %c0_19 = arith.constant 0 : index
    %107 = vector.load %arg4[%c0_18, %c0_19] : memref<16x32xbf16, #tpu.memory_space<vmem>>, vector<16x32xbf16>
    %108 = arith.truncf %106 : vector<32x256xf32> to vector<32x256xbf16>
    %cst_20 = arith.constant dense<0.000000e+00> : vector<16x256xf32>
    %109 = tpu.matmul %107, %108, %cst_20 {dimension_numbers = #tpu.dot_dimension_numbers<[1], [0], [0], [1], [0, 0, 1, 1], [], []>} : vector<16x32xbf16>, vector<32x256xbf16>, vector<16x256xf32> -> vector<16x256xf32>
    %c0_21 = arith.constant 0 : index
    %c0_22 = arith.constant 0 : index
    %110 = vector.load %arg5[%c0_21, %c0_22] : memref<16x1xf32, #tpu.memory_space<vmem>>, vector<16x1xf32>
    %111 = vector.broadcast %110 : vector<16x1xf32> to vector<16x256xf32>
    %112 = arith.addf %109, %111 : vector<16x256xf32>
    %c0_23 = arith.constant 0 : index
    %c0_24 = arith.constant 0 : index
    %c0_25 = arith.constant 0 : index
    %113 = vector.load %arg6[%c0_23, %c0_24, %c0_25] : memref<1x16x256xf32, #tpu.memory_space<vmem>>, vector<1x16x256xf32>
    %114 = vector.shape_cast %113 : vector<1x16x256xf32> to vector<16x256xf32>
    %115 = vector.shape_cast %112 : vector<16x256xf32> to vector<1x16x256xf32>
    tpu.vector_store %arg6[%c0_23, %c0_24, %c0_25], %115 {strides = array<i32>} : memref<1x16x256xf32, #tpu.memory_space<vmem>>, vector<1x16x256xf32>,
    return
  }
  func.func @transform_0(%arg0: i32) -> (i32, i32, i32) {
    %c0_i32 = arith.constant 0 : i32
    %c0_i32_0 = arith.constant 0 : i32
    %c0_i32_1 = arith.constant 0 : i32
    return %arg0, %c0_i32, %c0_i32_0 : i32, i32, i32
  }
  func.func @transform_1(%arg0: i32) -> (i32, i32) {
    %c0_i32 = arith.constant 0 : i32
    %c0_i32_0 = arith.constant 0 : i32
    %c0_i32_1 = arith.constant 0 : i32
    return %c0_i32, %c0_i32_0 : i32, i32
  }
  func.func @transform_2(%arg0: i32) -> (i32, i32) {
    %c0_i32 = arith.constant 0 : i32
    %c0_i32_0 = arith.constant 0 : i32
    %c0_i32_1 = arith.constant 0 : i32
    return %c0_i32, %c0_i32_0 : i32, i32
  }
  func.func @transform_3(%arg0: i32) -> (i32, i32) {
    %c0_i32 = arith.constant 0 : i32
    %c0_i32_0 = arith.constant 0 : i32
    %c0_i32_1 = arith.constant 0 : i32
    return %c0_i32, %c0_i32_0 : i32, i32
  }
  func.func @transform_4(%arg0: i32) -> (i32, i32) {
    %c0_i32 = arith.constant 0 : i32
    %c0_i32_0 = arith.constant 0 : i32
    %c0_i32_1 = arith.constant 0 : i32
    return %c0_i32, %c0_i32_0 : i32, i32
  }
  func.func @transform_5(%arg0: i32) -> (i32, i32, i32) {
    %c0_i32 = arith.constant 0 : i32
    %c0_i32_0 = arith.constant 0 : i32
    %c0_i32_1 = arith.constant 0 : i32
    return %arg0, %c0_i32, %c0_i32_0 : i32, i32, i32
  }
}

</mosaic_0001>

<bundles_post_ra>
// kernel: feedforward_forward.1
= control target key start
LH: loop header
LB: loop body
LE: loop exit
PB: predicated region body
PF: predicated region fallthrough
CT: control target
= control target key end

     0   :  { %s1713_s18 = smov 0   ;;  %s3022_s0 = inlined_call_operand.vmem [shape: bf16[2,16,256], index: 0, kind: input, shape index: {}]   ;;  %s3023_s1 = inlined_call_operand.vmem [shape: bf16[64,16], index: 1, kind: input, shape index: {}]   ;;  %s3024_s2 = inlined_call_operand.vmem [shape: f32[64,16], index: 2, kind: input, shape index: {}]   ;;  %s3025_s3 = inlined_call_operand.vmem [shape: bf16[16,32], index: 3, kind: input, shape index: {}]   ;;  %s3026_s4 = inlined_call_operand.vmem [shape: f32[16,1], index: 4, kind: input, shape index: {}]   ;;  %s3027_s5 = inlined_call_operand.vmem [shape: f32[2,16,256], index: 5, kind: output, shape index: {}]  }
   0x1 LB: > { %s1528_s19 = sadd.s32 4294967295, %s1665_s18   ;;  %p1532_p0 = scmp.ge.s32.totalorder %s1665_s18, 1  ;;  %s1665_s18 = sphi %s1713_s18, %s15_s18  }
   0x2   : > { %p187_p1 = scmp.lt.s32.totalorder %s1665_s18, 3 }
   0x4   : > { %p188_p2 = pnand %p1532_p0, %p187_p1 }
   0x6   : > { %191 = sbr.rel (%p188_p2) target bundleno = 800 (0x320), region = 40 }
   0xd   : > { %v1724_v0 = vld [vmem:[%s3024_s2 + $0x10] sm:$0xff]  ;;  %p215_p3 = scmp.lt.s32.totalorder %s1528_s19, 1  ;;  %v1667_v1 = vmov 9   ;;  %v3028_v2 = vmov 0   ;;  %v1734_v3 = vld [vmem:[%s3024_s2 + $0x18] sm:$0xff]  ;;  %v1739_v4 = vld [vmem:[%s3024_s2] sm:$0xff] }
   0xe   : > { %1586 = vset.pattern.permute.xlu1 %v1667_v1  ;;  %359 = vmatprep.mubr.bf16.mxu0 %v3028_v2  ;;  %v1749_v5 = vld [vmem:[%s3024_s2 + $0x28] sm:$0xff]  ;;  %v1638_v7 = vld [vmem:[%s3023_s1] sm:$0xff]   ;;  %v1639_v10 = vld [vmem:[%s3023_s1 + $0x18] sm:$0xff]   ;;  %vm314_vm0 = vcmask 130048   ;;  %v1669_v15 = vmov 1   ;;  %v1670_v17 = vmov 6  }
   0xf   : > { %256 = vperm.xlu1 %1586, %v1724_v0   ;;  %s3258_s19 = smov (!%p215_p3, %s1528_s19), 1  ;;  %389 = vmatprep.mubr.bf16.mxu1 %v3028_v2  ;;  %v1758_v9 = vld [vmem:[%s3024_s2 + $0x8] sm:$0xff]  ;;  %v1768_v11 = vld [vmem:[%s3024_s2 + $0x38] sm:$0xff]  ;;  %v1773_v12 = vld [vmem:[%s3024_s2 + $0x20] sm:$0xff]  ;;  %v1671_v18 = vmov 7   ;;  %v1672_v19 = vmov 2  }
  0x10   : > { %1585 = vset.pattern.permute.xlu0 %v1667_v1  ;;  %s1557_s26 = sshll.u32 %s3258_s19, 4  ;;  %v1784_v13 = vld [vmem:[%s3024_s2 + $0x30] sm:$0xff]  ;;  %v1640_v14 = vld [vmem:[%s3023_s1 + $0x8] sm:$0xff]   ;;  %v1673_v20 = vmov 8   ;;  %v3035_v21 = vmov 4   ;;  %v3030_v22 = vmov 3  }
  0x11   : > { %246 = vperm.xlu0 %1585, %v1739_v4   ;;  %s219_s29 = scalar_lea.vmem %s3022_s0, %s1557_s26  ;;  %v1641_v16 = vld [vmem:[%s3023_s1 + $0x10] sm:$0xff]   ;;  %v3033_v47 = vmov 5   ;;  %v3031_v59 = vmov 10   ;;  %s1678_s25 = smov 1   ;;  %vm1422_vm11 = vcmask 261120  }
  0x12   : > { %v1635_v6 = vld [vmem:[%s219_s29 + $0x4] ss:$8 sps:$4 sm:$0xff]   ;;  %v1637_v8 = vld [vmem:[%s219_s29] ss:$8 sps:$4 sm:$0xff]   ;;  %s1679_s26 = smov 127   ;;  %s1681_s27 = smov 16  }
  0x13   : > { %261 = vperm.xlu1 %1586, %v1734_v3   ;;  %327 = vmatprep.subr.bf16.mxu0 %v1635_v6  ;;  %s1682_s28 = smov 112   ;;  %s1558_s10 = sshll.u32 %s3258_s19, 5 }
  0x14   : > { %1559 = vmatprep.subr.bf16.mxu1 %v1635_v6  ;;  %328 = vmatpush1.bf16.msra.mxu0 %v1637_v8  ;;  %s224_s13 = scalar_lea.vmem %s3027_s5, %s1558_s10 }
  0x15   : > { %1560 = vmatpush1.bf16.msra.mxu1 %v1637_v8  ;;  %251 = vperm.xlu0 %1585, %v1758_v9  }
  0x17   : > { %271 = vperm.xlu1 %1586, %v1749_v5   ;;  %1543 = vmatmul.mubr.msk.bf16.vlgmr.msra.gmra.mrb[0].mxu0 %vm314_vm0, %v1638_v7 }
  0x18   : > { %1546 = vmatmul.mubr.msk.bf16.vlgmr.msra.gmra.mrb[0].mxu1 %vm314_vm0, %v1639_v10  ;;  %369 = vmatprep.mubr.bf16.mxu0 %v3028_v2 }
  0x19   : > { %1458 = vmatprep.mubr.bf16.mxu1 %v3028_v2  ;;  %266 = vperm.xlu0 %1585, %v1773_v12  }
  0x1b   : > { %281 = vperm.xlu1 %1586, %v1768_v11  }
  0x1d   : > { %276 = vperm.xlu0 %1585, %v1784_v13  }
  0x1f   : > { %1588 = vset.pattern.permute.xlu1 %v3028_v2  ;;  %1544 = vmatmul.mubr.msk.bf16.gmra.mrb[4].mxu0 %vm314_vm0, %v1640_v14 }
  0x20   : > { %586 = vperm.xlu1 %1588, %v1758_v9   ;;  %379 = vmatprep.mubr.bf16.mxu0 %v3028_v2 }
  0x21   : > { %1587 = vset.pattern.permute.xlu0 %v3028_v2 }
  0x22   : > { %582 = vperm.xlu0 %1587, %v1739_v4  }
  0x24   : > { %1589 = vset.pattern.permute.xlu1 %v1669_v15 }
  0x25   : > { %630 = vperm.xlu1 %1589, %v1739_v4  }
  0x26   : > { %590 = vperm.xlu0 %1587, %v1724_v0  }
  0x27   : > { %1545 = vmatmul.mubr.msk.bf16.gmra.mrb[8].mxu0 %vm314_vm0, %v1641_v16 }
  0x29   : > { %1590 = vset.pattern.permute.xlu1 %v1670_v17 }
  0x2a   : > { %934 = vperm.xlu1 %1590, %v1739_v4   ;;  %598 = vperm.xlu0 %1587, %v1773_v12  }
  0x2e   : > { %938 = vperm.xlu1 %1590, %v1758_v9   ;;  %606 = vperm.xlu0 %1587, %v1784_v13  }
  0x32   : > { %1591 = vset.pattern.permute.xlu1 %v1671_v18  ;;  %1606 = vset.pattern.permute.xlu0 %v1669_v15 }
  0x33   : > { %986 = vperm.xlu1 %1591, %v1758_v9   ;;  %634 = vperm.xlu0 %1606, %v1758_v9  }
  0x37   : > { %1592 = vset.pattern.permute.xlu1 %v1672_v19  ;;  %642 = vperm.xlu0 %1606, %v1734_v3  }
  0x38   : > { %694 = vperm.xlu1 %1592, %v1739_v4  }
  0x3b   : > { %650 = vperm.xlu0 %1606, %v1749_v5  }
  0x3c   : > { %1593 = vset.pattern.permute.xlu1 %v1673_v20 }
  0x3d   : > { %1046 = vperm.xlu1 %1593, %v1739_v4  }
  0x3f   : > { %658 = vperm.xlu0 %1606, %v1768_v11  }
  0x41   : > { %1050 = vperm.xlu1 %1593, %v1758_v9  }
  0x43   : > { %1609 = vset.pattern.permute.xlu0 %v1671_v18 }
  0x44   : > { %982 = vperm.xlu0 %1609, %v1739_v4  }
  0x45   : > { %1594 = vset.pattern.permute.xlu1 %v3028_v2 }
  0x46   : > { %594 = vperm.xlu1 %1594, %v1734_v3  }
  0x48   : > { %990 = vperm.xlu0 %1609, %v1724_v0  }
  0x4a   : > { %1595 = vset.pattern.permute.xlu1 %v1669_v15 }
  0x4b   : > { %638 = vperm.xlu1 %1595, %v1724_v0  }
  0x4c   : > { %998 = vperm.xlu0 %1609, %v1773_v12  }
  0x4f   : > { %1596 = vset.pattern.permute.xlu1 %v1670_v17 }
  0x50   : > { %942 = vperm.xlu1 %1596, %v1724_v0   ;;  %1006 = vperm.xlu0 %1609, %v1784_v13  }
  0x54   : > { %946 = vperm.xlu1 %1596, %v1734_v3   ;;  %1611 = vset.pattern.permute.xlu0 %v1672_v19 }
  0x55   : > { %698 = vperm.xlu0 %1611, %v1758_v9  }
  0x58   : > { %1597 = vset.pattern.permute.xlu1 %v1671_v18 }
  0x59   : > { %994 = vperm.xlu1 %1597, %v1734_v3   ;;  %706 = vperm.xlu0 %1611, %v1734_v3  }
  0x5d   : > { %1598 = vset.pattern.permute.xlu1 %v1672_v19  ;;  %714 = vperm.xlu0 %1611, %v1749_v5  }
  0x5e   : > { %702 = vperm.xlu1 %1598, %v1724_v0  }
  0x61   : > { %722 = vperm.xlu0 %1611, %v1768_v11  }
  0x62   : > { %1599 = vset.pattern.permute.xlu1 %v1673_v20 }
  0x63   : > { %1054 = vperm.xlu1 %1599, %v1724_v0  }
  0x65   : > { %1617 = vset.pattern.permute.xlu0 %v3035_v21 }
  0x66   : > { %810 = vperm.xlu0 %1617, %v1758_v9  }
  0x67   : > { %1058 = vperm.xlu1 %1599, %v1734_v3  }
  0x6a   : > { %818 = vperm.xlu0 %1617, %v1734_v3  }
  0x6b   : > { %1600 = vset.pattern.permute.xlu1 %v3028_v2 }
  0x6c   : > { %602 = vperm.xlu1 %1600, %v1749_v5  }
  0x6e   : > { %1621 = vset.pattern.permute.xlu0 %v3030_v22 }
  0x6f   : > { %758 = vperm.xlu0 %1621, %v1739_v4  }
  0x70   : > { %1601 = vset.pattern.permute.xlu1 %v1669_v15 }
  0x71   : > { %646 = vperm.xlu1 %1601, %v1773_v12  }
  0x73   : > { %766 = vperm.xlu0 %1621, %v1724_v0  }
  0x75   : > { %1602 = vset.pattern.permute.xlu1 %v1670_v17 }
  0x76   : > { %950 = vperm.xlu1 %1602, %v1773_v12  }
  0x7a   : > { %954 = vperm.xlu1 %1602, %v1749_v5  }
  0x7e   : > { %1603 = vset.pattern.permute.xlu1 %v1671_v18 }
  0x7f   : > { %1002 = vperm.xlu1 %1603, %v1749_v5  }
  0x83   : > { %1604 = vset.pattern.permute.xlu1 %v1672_v19 }
  0x84   : > { %710 = vperm.xlu1 %1604, %v1773_v12  }
  0x88   : > { %1605 = vset.pattern.permute.xlu1 %v1673_v20 }
  0x89   : > { %1062 = vperm.xlu1 %1605, %v1773_v12  }
  0x8d   : > { %1066 = vperm.xlu1 %1605, %v1749_v5  }
  0x8e   : > { %v1864_v23 = vpop.permute.xlu1 %256 }
  0x90   : > { %v1866_v24 = vpop.permute.xlu0 %246 }
  0x91   : > { %1607 = vset.pattern.permute.xlu1 %v3028_v2 }
  0x92   : > { %v1869_v25 = vpop.permute.xlu1 %261  ;;  %610 = vperm.xlu1 %1607, %v1768_v11  }
  0x94   : > { %v1875_v27 = vpop.permute.xlu0 %251 }
  0x96   : > { %v1872_v26 = vpop.permute.xlu1 %271  ;;  %1608 = vset.pattern.permute.xlu1 %v1669_v15 }
  0x97   : > { %654 = vperm.xlu1 %1608, %v1784_v13  }
  0x98   : > { %v1880_v29 = vpop.permute.xlu0 %266 }
  0x9a   : > { %v1878_v28 = vpop.permute.xlu1 %281 }
  0x9b   : > { %1610 = vset.pattern.permute.xlu1 %v1670_v17 }
  0x9c   : > { %958 = vperm.xlu1 %1610, %v1784_v13   ;;  %v1884_v30 = vpop.permute.xlu0 %276 }
  0x9f   : > { %v1886_v31 = vpop.permute.xlu1 %586 }
  0xa0   : > { %962 = vperm.xlu1 %1610, %v1768_v11  }
  0xa1   : > { %v1889_v32 = vpop.permute.xlu0 %582 }
  0xa4   : > { %1612 = vset.pattern.permute.xlu1 %v1671_v18  ;;  %v1892_v33 = vpop.permute.xlu1 %630 }
  0xa5   : > { %1010 = vperm.xlu1 %1612, %v1768_v11   ;;  %v1895_v34 = vpop.permute.xlu0 %590 }
  0xa6   : > { %3104 = vst [vmem:[#allocation2_spill] sm:$0xff] %v1895_v34 }
  0xa9   : > { %1613 = vset.pattern.permute.xlu1 %v1672_v19  ;;  %v1898_v35 = vpop.permute.xlu1 %934  ;;  %v1901_v36 = vpop.permute.xlu0 %598 }
  0xaa   : > { %718 = vperm.xlu1 %1613, %v1784_v13   ;;  %3105 = vst [vmem:[#allocation3_spill] sm:$0xff] %v1901_v36 }
  0xad   : > { %v1903_v37 = vpop.permute.xlu1 %938  ;;  %v1907_v38 = vpop.permute.xlu0 %606 }
  0xae   : > { %3106 = vst [vmem:[#allocation4_spill] sm:$0xff] %v1903_v37  ;;  %1614 = vset.pattern.permute.xlu1 %v1673_v20 }
  0xaf   : > { %1070 = vperm.xlu1 %1614, %v1784_v13  }
  0xb2   : > { %v1909_v39 = vpop.permute.xlu1 %986  ;;  %v1912_v40 = vpop.permute.xlu0 %634 }
  0xb3   : > { %1074 = vperm.xlu1 %1614, %v1768_v11  }
  0xb6   : > { %v1918_v42 = vpop.permute.xlu0 %642 }
  0xb7   : > { %1615 = vset.pattern.permute.xlu1 %v3030_v22  ;;  %v1915_v41 = vpop.permute.xlu1 %694 }
  0xb8   : > { %762 = vperm.xlu1 %1615, %v1758_v9  }
  0xba   : > { %v1923_v44 = vpop.permute.xlu0 %650 }
  0xbb   : > { %3107 = vst [vmem:[#allocation5_spill] sm:$0xff] %v1923_v44 }
  0xbc   : > { %1616 = vset.pattern.permute.xlu1 %v3035_v21  ;;  %v1921_v43 = vpop.permute.xlu1 %1046 }
  0xbd   : > { %806 = vperm.xlu1 %1616, %v1739_v4  }
  0xbe   : > { %v1928_v46 = vpop.permute.xlu0 %658 }
  0xc0   : > { %v1926_v45 = vpop.permute.xlu1 %1050 }
  0xc1   : > { %3108 = vst [vmem:[#allocation6_spill] sm:$0xff] %v1926_v45  ;;  %1618 = vset.pattern.permute.xlu1 %v3033_v47 }
  0xc2   : > { %870 = vperm.xlu1 %1618, %v1739_v4  }
  0xc3   : > { %v1934_v49 = vpop.permute.xlu0 %982 }
  0xc5   : > { %v1932_v48 = vpop.permute.xlu1 %594 }
  0xc6   : > { %3109 = vst [vmem:[#allocation7_spill] sm:$0xff] %v1932_v48  ;;  %874 = vperm.xlu1 %1618, %v1758_v9  }
  0xc7   : > { %v1937_v50 = vpop.permute.xlu0 %990 }
  0xca   : > { %1619 = vset.pattern.permute.xlu1 %v3030_v22  ;;  %v1940_v51 = vpop.permute.xlu1 %638 }
  0xcb   : > { %770 = vperm.xlu1 %1619, %v1734_v3   ;;  %v1943_v52 = vpop.permute.xlu0 %998 }
  0xcc   : > { %3110 = vst [vmem:[#allocation8_spill] sm:$0xff] %v1943_v52 }
  0xcf   : > { %1620 = vset.pattern.permute.xlu1 %v3035_v21  ;;  %v1946_v53 = vpop.permute.xlu1 %942  ;;  %v1949_v54 = vpop.permute.xlu0 %1006 }
  0xd0   : > { %3111 = vst [vmem:[#allocation9_spill] sm:$0xff] %v1946_v53  ;;  %814 = vperm.xlu1 %1620, %v1724_v0   ;;  %3112 = vst [vmem:[#allocation10_spill] sm:$0xff] %v1949_v54 }
  0xd3   : > { %v1951_v55 = vpop.permute.xlu1 %946 }
  0xd4   : > { %3113 = vst [vmem:[#allocation11_spill] sm:$0xff] %v1951_v55  ;;  %1622 = vset.pattern.permute.xlu1 %v3033_v47  ;;  %v1955_v56 = vpop.permute.xlu0 %698 }
  0xd5   : > { %878 = vperm.xlu1 %1622, %v1724_v0  }
  0xd8   : > { %v1957_v57 = vpop.permute.xlu1 %994  ;;  %v1960_v58 = vpop.permute.xlu0 %706 }
  0xd9   : > { %882 = vperm.xlu1 %1622, %v1734_v3   ;;  %3114 = vst [vmem:[#allocation12_spill] sm:$0xff] %v1960_v58 }
  0xdc   : > { %v1966_v61 = vpop.permute.xlu0 %714 }
  0xdd   : > { %1623 = vset.pattern.permute.xlu1 %v3031_v59  ;;  %v1963_v60 = vpop.permute.xlu1 %702  ;;  %3116 = vst [vmem:[#allocation14_spill] sm:$0xff] %v1966_v61 }
  0xde   : > { %3115 = vst [vmem:[#allocation13_spill] sm:$0xff] %v1963_v60  ;;  %1114 = vperm.xlu1 %1623, %v1758_v9  }
  0xe0   : > { %v1971_v63 = vpop.permute.xlu0 %722 }
  0xe1   : > { %3118 = vst [vmem:[#allocation16_spill] sm:$0xff] %v1971_v63  ;;  %v3165_v63 = vmov 0.0  }
  0xe2   : > { %1118 = vperm.xlu1 %1623, %v1724_v0   ;;  %v1969_v62 = vpop.permute.xlu1 %1054 }
  0xe3   : > { %3117 = vst [vmem:[#allocation15_spill] sm:$0xff] %v1969_v62 }
  0xe5   : > { %v811_v7 = vpop.permute.xlu0 %810 }
  0xe6   : > { %v1973_v1 = vpop.permute.xlu1 %1058  ;;  %1624 = vset.pattern.permute.xlu1 %v3030_v22 }
  0xe7   : > { %3119 = vst [vmem:[#allocation17_spill] sm:$0xff] %v1973_v1  ;;  %v3156_v1 = vmov 0  }
  0xe9   : > { %v819_v21 = vpop.permute.xlu0 %818 }
  0xea   : > { %v361_v8 = vpop.f32.mrb[0].mxu0 }
  0xeb   : > { %v1976_v6 = vpop.permute.xlu1 %602  ;;  %v391_v10 = vpop.f32.mrb[0].mxu1  ;;  %v1979_v14 = vadd.f32 %v361_v8, %v1866_v24 }
  0xec   : > { %3120 = vst [vmem:[#allocation18_spill] sm:$0xff] %v1976_v6  ;;  %v363_v9 = vpop.f32.mrb[1].mxu0  ;;  %v393_v15 = vpop.f32.mrb[1].mxu1  ;;  %v1992_v8 = vadd.f32 %v391_v10, %v1884_v30 }
  0xed   : > { %3121 = vst [vmem:[#allocation19_spill] sm:$0xff] %v1979_v14  ;;  %v365_v16 = vpop.f32.mrb[2].mxu0  ;;  %v395_v0 = vpop.f32.mrb[2].mxu1  ;;  %451 = vrot.lane.b32.xlu0 %v1979_v14, %s1678_s25  ;;  %v2032_v61 = vadd.f32 %v363_v9, %v1866_v24  ;;  %v2233_v37 = vmul.f32 %v1934_v49, %v1979_v14 }
  0xee   : > { %v1982_v17 = vadd.f32 %v365_v16, %v1875_v27  ;;  %v367_v18 = vpop.f32.mrb[3].mxu0  ;;  %v397_v19 = vpop.f32.mrb[3].mxu1  ;;  %3123 = vst [vmem:[#allocation21_spill] sm:$0xff] %v1992_v8  ;;  %v2003_v59 = vadd.f32 %v395_v0, %v1878_v28 }
  0xef   : > { %v1987_v20 = vadd.f32 %v367_v18, %v1875_v27  ;;  %3130 = vst [vmem:[#allocation28_spill] sm:$0xff] %v2032_v61  ;;  %v2046_v24 = vadd.f32 %v397_v19, %v1878_v28 }
  0xf0   : > { %v1989_v2 = vpop.permute.xlu1 %646  ;;  %v1995_v22 = vmul.f32 %v811_v7, %v1982_v17  ;;  %453 = vrot.lane.b32.xlu1 %v1982_v17, %s1678_s25  ;;  %3125 = vst [vmem:[#allocation23_spill] sm:$0xff] %v2003_v59 }
  0xf1   : > { %3122 = vst [vmem:[#allocation20_spill] sm:$0xff] %v1989_v2  ;;  %v2000_v16 = vmul.f32 %v811_v7, %v1987_v20  ;;  %463 = vrot.lane.b32.xlu0 %v1992_v8, %s1678_s25  ;;  %3133 = vst [vmem:[#allocation31_spill] sm:$0xff] %v2046_v24 }
  0xf2   : > { %v371_v27 = vpop.f32.mrb[4].mxu0 }
  0xf3   : > { %3124 = vst [vmem:[#allocation22_spill] sm:$0xff] %v2000_v16  ;;  %v373_v10 = vpop.f32.mrb[5].mxu0 }
  0xf4   : > { %465 = vrot.lane.b32.xlu1 %v2003_v59, %s1678_s25  ;;  %v375_v47 = vpop.f32.mrb[6].mxu0  ;;  %v2078_v19 = vadd.f32 %v373_v10, %v1864_v23 }
  0xf5   : > { %v2007_v18 = vpop.permute.xlu1 %950  ;;  %v2012_v52 = vadd.f32 %v375_v47, %v1869_v25  ;;  %v377_v7 = vpop.f32.mrb[7].mxu0  ;;  %516 = vrot.lane.b32.xlu0 %v1979_v14, %s1679_s26 }
  0xf6   : > { %3126 = vst [vmem:[#allocation24_spill] sm:$0xff] %v2007_v18  ;;  %v2017_v0 = vadd.f32 %v377_v7, %v1869_v25 }
  0xf7   : > { %v2022_v18 = vmul.f32 %v819_v21, %v2012_v52 }
  0xf8   : > { %518 = vrot.lane.b32.xlu1 %v1982_v17, %s1679_s26  ;;  %v2027_v36 = vmul.f32 %v819_v21, %v2017_v0  ;;  %v2041_v21 = vadd.f32 %v393_v15, %v1884_v30  ;;  %v2065_v30 = vadd.f32 %v371_v27, %v1864_v23 }
  0xf9   : > { %v2019_v2 = vpop.permute.xlu1 %954  ;;  %3128 = vst [vmem:[#allocation26_spill] sm:$0xff] %v2022_v18  ;;  %528 = vrot.lane.b32.xlu0 %v1992_v8, %s1679_s26 }
  0xfa   : > { %3127 = vst [vmem:[#allocation25_spill] sm:$0xff] %v2019_v2  ;;  %3129 = vst [vmem:[#allocation27_spill] sm:$0xff] %v2027_v36  ;;  %v381_v47 = vpop.f32.mrb[8].mxu0  ;;  %v3153_v36 = vmov 3  }
  0xfb   : > { %v383_v25 = vpop.f32.mrb[9].mxu0  ;;  %3132 = vst [vmem:[#allocation30_spill] sm:$0xff] %v2041_v21 }
  0xfc   : > { %530 = vrot.lane.b32.xlu1 %v2003_v59, %s1679_s26  ;;  %v385_v2 = vpop.f32.mrb[10].mxu0 }
  0xfd   : > { %v387_v6 = vpop.f32.mrb[11].mxu0  ;;  %467 = vrot.lane.b32.xlu0 %v2032_v61, %s1678_s25  ;;  %v2098_v23 = vadd.f32 %v385_v2, %v1872_v26 }
  0xfe   : > { %v2036_v7 = vpop.permute.xlu1 %1002  ;;  %v2116_v2 = vadd.f32 %v387_v6, %v1872_v26  ;;  %v3147_v6 = vmov 4  }
  0xff   : > { %3131 = vst [vmem:[#allocation29_spill] sm:$0xff] %v2036_v7  ;;  %3140 = vst [vmem:[#allocation38_spill] sm:$0xff] %v2098_v23 }
 0x100   : > { %469 = vrot.lane.b32.xlu1 %v1987_v20, %s1678_s25  ;;  %3144 = vst [vmem:[#allocation42_spill] sm:$0xff] %v2116_v2 }
 0x101   : > { %479 = vrot.lane.b32.xlu0 %v2041_v21, %s1678_s25 }
 0x103   : > { %v2048_v9 = vpop.permute.xlu1 %710 }
 0x104   : > { %3134 = vst [vmem:[#allocation32_spill] sm:$0xff] %v2048_v9  ;;  %481 = vrot.lane.b32.xlu1 %v2046_v24, %s1678_s25 }
 0x105   : > { %532 = vrot.lane.b32.xlu0 %v2032_v61, %s1679_s26 }
 0x108   : > { %v2056_v7 = vpop.permute.xlu1 %1062  ;;  %534 = vrot.lane.b32.xlu1 %v1987_v20, %s1679_s26 }
 0x109   : > { %3135 = vst [vmem:[#allocation33_spill] sm:$0xff] %v2056_v7  ;;  %544 = vrot.lane.b32.xlu0 %v2041_v21, %s1679_s26 }
 0x10c   : > { %v2062_v28 = vpop.permute.xlu1 %1066  ;;  %546 = vrot.lane.b32.xlu1 %v2046_v24, %s1679_s26 }
 0x10d   : > { %3136 = vst [vmem:[#allocation34_spill] sm:$0xff] %v2062_v28  ;;  %455 = vrot.lane.b32.xlu0 %v2065_v30, %s1678_s25  ;;  %v2093_v28 = vadd.f32 %v381_v47, %v1880_v29  ;;  %v2111_v47 = vadd.f32 %v383_v25, %v1880_v29 }
 0x10f   : > { %3139 = vst [vmem:[#allocation37_spill] sm:$0xff] %v2093_v28  ;;  %3143 = vst [vmem:[#allocation41_spill] sm:$0xff] %v2111_v47 }
 0x110   : > { %457 = vrot.lane.b32.xlu1 %v2012_v52, %s1678_s25 }
 0x111   : > { %v2071_v15 = vpop.permute.xlu1 %610  ;;  %520 = vrot.lane.b32.xlu0 %v2065_v30, %s1679_s26 }
 0x112   : > { %3137 = vst [vmem:[#allocation35_spill] sm:$0xff] %v2071_v15  ;;  %v661_v15 = vmul.f32 %v1892_v33, %v1979_v14  ;;  %v2291_v14 = vmul.f32 %v1940_v51, %v2065_v30 }
 0x114   : > { %522 = vrot.lane.b32.xlu1 %v2012_v52, %s1679_s26 }
 0x115   : > { %471 = vrot.lane.b32.xlu0 %v2078_v19, %s1678_s25 }
 0x116   : > { %v2082_v27 = vpop.permute.xlu1 %654 }
 0x118   : > { %473 = vrot.lane.b32.xlu1 %v2017_v0, %s1678_s25 }
 0x119   : > { %536 = vrot.lane.b32.xlu0 %v2078_v19, %s1679_s26 }
 0x11b   : > { %v2088_v7 = vpop.permute.xlu1 %958 }
 0x11c   : > { %3138 = vst [vmem:[#allocation36_spill] sm:$0xff] %v2088_v7  ;;  %538 = vrot.lane.b32.xlu1 %v2017_v0, %s1679_s26 }
 0x11d   : > { %459 = vrot.lane.b32.xlu0 %v2093_v28, %s1678_s25 }
 0x11f   : > { %v2100_v10 = vpop.permute.xlu1 %962 }
 0x120   : > { %3141 = vst [vmem:[#allocation39_spill] sm:$0xff] %v2100_v10  ;;  %461 = vrot.lane.b32.xlu1 %v2098_v23, %s1678_s25 }
 0x121   : > { %524 = vrot.lane.b32.xlu0 %v2093_v28, %s1679_s26  ;;  %v3151_v28 = vmov 10  }
 0x124   : > { %v2108_v9 = vpop.permute.xlu1 %1010  ;;  %526 = vrot.lane.b32.xlu1 %v2098_v23, %s1679_s26 }
 0x125   : > { %3142 = vst [vmem:[#allocation40_spill] sm:$0xff] %v2108_v9  ;;  %475 = vrot.lane.b32.xlu0 %v2111_v47, %s1678_s25 }
 0x128   : > { %477 = vrot.lane.b32.xlu1 %v2116_v2, %s1678_s25 }
 0x129   : > { %v2120_v16 = vpop.permute.xlu1 %718  ;;  %540 = vrot.lane.b32.xlu0 %v2111_v47, %s1679_s26  ;;  %v3149_v47 = vmov 5  }
 0x12c   : > { %542 = vrot.lane.b32.xlu1 %v2116_v2, %s1679_s26 }
 0x12d   : > { %778 = vperm.xlu0 %1621, %v1749_v5  }
 0x12e   : > { %v2128_v29 = vpop.permute.xlu1 %1070 }
 0x12f   : > { %3145 = vst [vmem:[#allocation43_spill] sm:$0xff] %v2128_v29 }
 0x130   : > { %774 = vperm.xlu1 %1624, %v1773_v12  }
 0x131   : > { %786 = vperm.xlu0 %1621, %v1768_v11  }
 0x132   : > { %v2132_v26 = vpop.permute.xlu1 %1074 }
 0x133   : > { %3146 = vst [vmem:[#allocation44_spill] sm:$0xff] %v2132_v26 }
 0x134   : > { %1625 = vset.pattern.permute.xlu1 %v3147_v6 }
 0x135   : > { %822 = vperm.xlu1 %1625, %v1773_v12   ;;  %1628 = vset.pattern.permute.xlu0 %v3149_v47 }
 0x136   : > { %886 = vperm.xlu0 %1628, %v1773_v12  }
 0x137   : > { %v2137_v25 = vpop.permute.xlu1 %762 }
 0x138   : > { %3148 = vst [vmem:[#allocation45_spill] sm:$0xff] %v2137_v25 }
 0x139   : > { %826 = vperm.xlu1 %1625, %v1749_v5  }
 0x13a   : > { %894 = vperm.xlu0 %1628, %v1784_v13  }
 0x13c   : > { %v2142_v2 = vpop.permute.xlu1 %806 }
 0x13d   : > { %3150 = vst [vmem:[#allocation46_spill] sm:$0xff] %v2142_v2  ;;  %1626 = vset.pattern.permute.xlu1 %v3149_v47 }
 0x13e   : > { %890 = vperm.xlu1 %1626, %v1749_v5   ;;  %1630 = vset.pattern.permute.xlu0 %v3151_v28 }
 0x13f   : > { %1110 = vperm.xlu0 %1630, %v1739_v4  }
 0x141   : > { %v2148_v26 = vpop.permute.xlu1 %870 }
 0x142   : > { %3152 = vst [vmem:[#allocation47_spill] sm:$0xff] %v2148_v26  ;;  %1627 = vset.pattern.permute.xlu1 %v3153_v36  ;;  %v400_v26 = vlaneseq }
 0x143   : > { %782 = vperm.xlu1 %1627, %v1784_v13   ;;  %1122 = vperm.xlu0 %1630, %v1734_v3   ;;  %v2170_v3 = vpop.permute.xlu0 %758 }
 0x144   : > { %3158 = vst [vmem:[#allocation51_spill] sm:$0xff] %v2170_v3  ;;  %v3076_v3 = vmov 0.0  }
 0x145   : > { %v2153_v29 = vpop.permute.xlu1 %874 }
 0x146   : > { %3154 = vst [vmem:[#allocation48_spill] sm:$0xff] %v2153_v29 }
 0x147   : > { %1629 = vset.pattern.permute.xlu1 %v3147_v6  ;;  %1130 = vperm.xlu0 %1630, %v1749_v5   ;;  %v2176_v6 = vpop.permute.xlu0 %766 }
 0x148   : > { %830 = vperm.xlu1 %1629, %v1784_v13   ;;  %3160 = vst [vmem:[#allocation53_spill] sm:$0xff] %v2176_v6 }
 0x14a   : > { %v2159_v18 = vpop.permute.xlu1 %770 }
 0x14b   : > { %3155 = vst [vmem:[#allocation49_spill] sm:$0xff] %v2159_v18  ;;  %1633 = vset.pattern.permute.xlu0 %v3156_v1  ;;  %v2188_v18 = vand.u32 127, %v400_v26 }
 0x14c   : > { %834 = vperm.xlu1 %1629, %v1768_v11  }
 0x14d   : > { %vm483_vm2 = vcmp.lt.s32.totalorder %v2188_v18, 1  ;;  %vm548_vm5 = vcmp.lt.s32.totalorder %v2188_v18, 127  ;;  %vm439_vm7 = vcmp.ge.s32.totalorder %v2188_v18, 16  ;;  %vm1189_vm8 = vcmp.lt.s32.totalorder %v2188_v18, 16 }
 0x14e   : > { %vm1270_vm10 = vcmp.lt.s32.totalorder %v2188_v18, 112 }
 0x14f   : > { %v2163_v4 = vpop.permute.xlu1 %814 }
 0x150   : > { %1631 = vset.pattern.permute.xlu1 %v3149_v47 }
 0x151   : > { %898 = vperm.xlu1 %1631, %v1768_v11  }
 0x154   : > { %v2167_v36 = vpop.permute.xlu1 %878 }
 0x155   : > { %3157 = vst [vmem:[#allocation50_spill] sm:$0xff] %v2167_v36  ;;  %1632 = vset.pattern.permute.xlu1 %v3151_v28 }
 0x156   : > { %1126 = vperm.xlu1 %1632, %v1773_v12  }
 0x158   : > { %v2173_v5 = vpop.permute.xlu1 %882 }
 0x159   : > { %3159 = vst [vmem:[#allocation52_spill] sm:$0xff] %v2173_v5 }
 0x15a   : > { %1134 = vperm.xlu1 %1632, %v1784_v13  }
 0x15d   : > { %v2178_v29 = vpop.permute.xlu1 %1114 }
 0x15e   : > { %3161 = vst [vmem:[#allocation54_spill] sm:$0xff] %v2178_v29  ;;  %1138 = vperm.xlu1 %1632, %v1768_v11   ;;  %v2195_v11 = vadd.s32 128, %v2188_v18 }
 0x15f   : > { %v452_v55 = vpop.permute.xlu0 %451 }
 0x160   : > { %3163 = vst [vmem:[#allocation56_spill] sm:$0xff] %v2195_v11  ;;  %v414_v10 = vand.u32 15, %v2195_v11  ;;  %v2214_v11 = vmul.f32 %v1892_v33, %v2032_v61  ;;  %v2248_v33 = vmul.f32 %v1909_v39, %v1987_v20 }
 0x161   : > { %v2181_v47 = vpop.permute.xlu1 %1118 }
 0x162   : > { %3162 = vst [vmem:[#allocation55_spill] sm:$0xff] %v2181_v47  ;;  %1634 = vset.pattern.permute.xlu1 %v3156_v1  ;;  %v407_v47 = vand.u32 15, %v2188_v18  ;;  %vm428_vm3 = vcmp.gt.s32.totalorder %v414_v10, 0  ;;  %3167 = vst [vmem:[#allocation59_spill] sm:$0xff] %v2248_v33  ;;  %vm434_vm6 = vcmp.lt.s32.totalorder %v414_v10, 15  ;;  %v2271_v10 = vmul.f32 %v1928_v46, %v2003_v59 }
 0x163   : > { %v2184_v62 = vpop.permute.xlu0 %463  ;;  %v2223_v45 = vsel %vm428_vm3, 1.0, %v3165_v63 }
 0x164   : > { %vm427_vm1 = vcmp.gt.s32.totalorder %v407_v47, 0  ;;  %vm433_vm4 = vcmp.lt.s32.totalorder %v407_v47, 15 }
 0x165   : > { %v454_v28 = vpop.permute.xlu1 %453  ;;  %v2205_v58 = vsel %vm427_vm1, 1.0, %v3076_v3 }
 0x166   : > { %3164 = vst [vmem:[#allocation57_spill] sm:$0xff] %v2205_v58 }
 0x167   : > { %v517_v5 = vpop.permute.xlu0 %516 }
 0x169   : > { %v2186_v12 = vpop.permute.xlu1 %465 }
 0x16b   : > { %v2192_v53 = vpop.permute.xlu0 %528 }
 0x16d   : > { %v2190_v13 = vpop.permute.xlu1 %518 }
 0x16f   : > { %v468_v1 = vpop.permute.xlu0 %467 }
 0x170   : > { %v492_v36 = vsel %vm483_vm2, %v468_v1, %v452_v55  ;;  %v484_v47 = vsel %vm483_vm2, %v452_v55, %v468_v1  ;;  %v2275_v55 = vmul.f32 %v1928_v46, %v2046_v24  ;;  %v663_v1 = vmul.f32 %v1912_v40, %v1982_v17 }
 0x171   : > { %v2198_v29 = vpop.permute.xlu1 %530  ;;  %v2294_v46 = vmul.f32 %v2223_v45, %v484_v47  ;;  %v2311_v47 = vmul.f32 %v1940_v51, %v2078_v19  ;;  %v2332_v51 = vmul.f32 %v1957_v57, %v2012_v52 }
 0x172   : > { %3169 = vst [vmem:[#allocation61_spill] sm:$0xff] %v2275_v55  ;;  %v2345_v55 = vmul.f32 %v1923_v44, %v2098_v23  ;;  %v2364_v23 = vmul.f32 %v2108_v9, %v2003_v59  ;;  %v841_v59 = vmul.f32 %v2163_v4, %v2065_v30 }
 0x173   : > { %v2202_v26 = vpop.permute.xlu0 %479  ;;  %3174 = vst [vmem:[#allocation66_spill] sm:$0xff] %v2332_v51 }
 0x174   : > { %3176 = vst [vmem:[#allocation68_spill] sm:$0xff] %v2345_v55 }
 0x175   : > { %v470_v7 = vpop.permute.xlu1 %469 }
 0x176   : > { %v493_v2 = vsel %vm483_vm2, %v470_v7, %v454_v28 }
 0x177   : > { %v2210_v48 = vmul.f32 %v2205_v58, %v493_v2  ;;  %v533_v3 = vpop.permute.xlu0 %532  ;;  %v2227_v2 = vmul.f32 %v1934_v49, %v2032_v61  ;;  %v2244_v61 = vmul.f32 %v2205_v58, %v492_v36  ;;  %v498_v49 = vsel %vm483_vm2, %v2202_v26, %v2184_v62 }
 0x178   : > { %v557_v33 = vsel %vm548_vm5, %v533_v3, %v517_v5 }
 0x179   : > { %v791_v60 = vmul.f32 %v2137_v25, %v2210_v48  ;;  %v2220_v34 = vpop.permute.xlu1 %481  ;;  %v2237_v25 = vmul.f32 %v1912_v40, %v1987_v20  ;;  %v2265_v20 = vsel %vm433_vm4, 1.0, %v3165_v63  ;;  %v613_v24 = vmul.f32 %v1889_v32, %v2244_v61 }
 0x17a   : > { %v965_v55 = vmul.f32 %v1898_v35, %v2244_v61 }
 0x17b   : > { %v2240_v6 = vadd.f32 %v1995_v22, %v791_v60  ;;  %v2258_v22 = vmul.f32 %v1909_v39, %v1982_v17  ;;  %v2262_v60 = vmul.f32 %v1949_v54, %v1992_v8  ;;  %v549_v39 = vsel %vm548_vm5, %v517_v5, %v533_v3 }
 0x17c   : > { %v2282_v54 = vmul.f32 %v2205_v58, %v498_v49  ;;  %v2299_v40 = vmul.f32 %v2265_v20, %v549_v39  ;;  %v2303_v17 = vmul.f32 %v1937_v50, %v2065_v30  ;;  %v485_v3 = vsel %vm483_vm2, %v454_v28, %v470_v7 }
 0x17d   : > { %3166 = vst [vmem:[#allocation58_spill] sm:$0xff] %v2240_v6  ;;  %3168 = vst [vmem:[#allocation60_spill] sm:$0xff] %v2262_v60  ;;  %v535_v36 = vpop.permute.xlu1 %534  ;;  %v2267_v6 = vpop.permute.xlu0 %544  ;;  %v2285_v60 = vsel %vm434_vm6, 1.0, %v3165_v63  ;;  %v2315_v63 = vmul.f32 %v1937_v50, %v2078_v19  ;;  %v2319_v39 = vmul.f32 %v1918_v42, %v2012_v52  ;;  %v2328_v28 = vmul.f32 %v1918_v42, %v2017_v0 }
 0x17e   : > { %3170 = vst [vmem:[#allocation62_spill] sm:$0xff] %v2282_v54  ;;  %3171 = vst [vmem:[#allocation63_spill] sm:$0xff] %v2303_v17  ;;  %v2322_v17 = vmul.f32 %v2285_v60, %v557_v33  ;;  %v725_v7 = vmul.f32 %v1915_v41, %v2299_v40  ;;  %v625_v50 = vmul.f32 %v1907_v38, %v2282_v54 }
 0x17f   : > { %3172 = vst [vmem:[#allocation64_spill] sm:$0xff] %v2315_v63  ;;  %3173 = vst [vmem:[#allocation65_spill] sm:$0xff] %v2328_v28  ;;  %v550_v63 = vsel %vm548_vm5, %v2190_v13, %v535_v36  ;;  %v2341_v33 = vmul.f32 %v1957_v57, %v2017_v0  ;;  %v614_v42 = vmul.f32 %v1889_v32, %v2294_v46 }
 0x180   : > { %v677_v52 = vadd.f32 %v661_v15, %v613_v24  ;;  %v2350_v51 = vmul.f32 %v2223_v45, %v485_v3  ;;  %v555_v28 = vsel %vm548_vm5, %v2192_v53, %v2267_v6  ;;  %v673_v57 = vmul.f32 %v2082_v27, %v1992_v8 }
 0x181   : > { %v2307_v5 = vpop.permute.xlu1 %546  ;;  %v456_v49 = vpop.permute.xlu0 %455  ;;  %3175 = vst [vmem:[#allocation67_spill] sm:$0xff] %v2341_v33  ;;  %v2360_v0 = vmul.f32 %v2082_v27, %v2041_v21  ;;  %v2367_v32 = vmul.f32 %v2265_v20, %v555_v28  ;;  %v726_v3 = vmul.f32 %v1915_v41, %v2322_v17  ;;  %v558_v8 = vsel %vm548_vm5, %v535_v36, %v2190_v13 }
 0x182   : > { %v2377_v27 = vmul.f32 %v2265_v20, %v550_v63  ;;  %v741_v21 = vadd.f32 %v725_v7, %v677_v52  ;;  %v615_v28 = vmul.f32 %v1886_v31, %v2210_v48  ;;  %v689_v9 = vadd.f32 %v673_v57, %v625_v50 }
 0x183   : > { %v737_v44 = vmul.f32 %v2120_v16, %v2367_v32  ;;  %v678_v41 = vadd.f32 %v2214_v11, %v614_v42  ;;  %v966_v63 = vmul.f32 %v1898_v35, %v2294_v46  ;;  %v616_v13 = vmul.f32 %v1886_v31, %v2350_v51 }
 0x184   : > { %1157 = vrot.lane.b32.xlu1 %v741_v21, %s1681_s27  ;;  %v499_v30 = vsel %vm483_vm2, %v2220_v34, %v2186_v12  ;;  %v1077_v11 = vmul.f32 %v1921_v43, %v2299_v40  ;;  %v2400_v36 = vmul.f32 %v2285_v60, %v558_v8  ;;  %v727_v31 = vmul.f32 %v1955_v56, %v2377_v27 }
 0x185   : > { %v2369_v24 = vpop.permute.xlu1 %457  ;;  %v521_v15 = vpop.permute.xlu0 %520  ;;  %v753_v7 = vadd.f32 %v737_v44, %v689_v9  ;;  %v742_v42 = vadd.f32 %v726_v3, %v678_v41  ;;  %v556_v8 = vsel %vm548_vm5, %v2198_v29, %v2307_v5  ;;  %v679_v44 = vadd.f32 %v663_v1, %v615_v28 }
 0x186   : > { %v1029_v3 = vadd.f32 %v2233_v37, %v965_v55  ;;  %v1030_v41 = vadd.f32 %v2227_v2, %v966_v63  ;;  %v728_v1 = vmul.f32 %v1955_v56, %v2400_v36 }
 0x187   : > { %1169 = vrot.lane.b32.xlu0 %v753_v7, %s1681_s27  ;;  %v743_v28 = vadd.f32 %v727_v31, %v679_v44  ;;  %v3177_v7 = vld [vmem:[#allocation53_spill] sm:$0xff] }
 0x188   : > { %1173 = vrot.lane.b32.xlu1 %v742_v42, %s1681_s27  ;;  %v1093_v63 = vadd.f32 %v1077_v11, %v1029_v3  ;;  %v3180_v42 = vld [vmem:[#allocation4_spill] sm:$0xff]  ;;  %v491_v11 = vsel %vm483_vm2, %v2186_v12, %v2220_v34 }
 0x189   : > { %v2402_v50 = vpop.permute.xlu1 %522  ;;  %v472_v35 = vpop.permute.xlu0 %471  ;;  %v967_v31 = vmul.f32 %v3180_v42, %v2210_v48  ;;  %v3184_v12 = vld [vmem:[#allocation16_spill] sm:$0xff]  ;;  %v2481_v33 = vmul.f32 %v2223_v45, %v491_v11  ;;  %v3189_v11 = vld [vmem:[#allocation7_spill] sm:$0xff] }
 0x18a   : > { %v486_v21 = vsel %vm483_vm2, %v456_v49, %v472_v35  ;;  %v494_v52 = vsel %vm483_vm2, %v472_v35, %v456_v49  ;;  %v490_v49 = vsel %vm483_vm2, %v2184_v62, %v2202_v26  ;;  %v2428_v35 = vmul.f32 %v2205_v58, %v499_v30 }
 0x18b   : > { %v2416_v9 = vmul.f32 %v2205_v58, %v494_v52  ;;  %v2419_v57 = vmul.f32 %v2223_v45, %v486_v21  ;;  %v1078_v62 = vmul.f32 %v1921_v43, %v2322_v17  ;;  %v2442_v26 = vmul.f32 %v2265_v20, %v556_v8  ;;  %1159 = vrot.lane.b32.xlu0 %v743_v28, %s1681_s27 }
 0x18c   : > { %v680_v30 = vadd.f32 %v2237_v25, %v616_v13  ;;  %v968_v52 = vmul.f32 %v3180_v42, %v2350_v51  ;;  %v2456_v43 = vmul.f32 %v2223_v45, %v490_v49  ;;  %v3182_v25 = vld [vmem:[#allocation35_spill] sm:$0xff]  ;;  %1238 = vrot.lane.b32.xlu1 %v1093_v63, %s1682_s28 }
 0x18d   : > { %v793_v21 = vmul.f32 %v3177_v7, %v2416_v9  ;;  %v2437_v37 = vmul.f32 %v3177_v7, %v2419_v57  ;;  %v474_v2 = vpop.permute.xlu1 %473  ;;  %v537_v55 = vpop.permute.xlu0 %536  ;;  %3179 = vst [vmem:[#allocation69_spill] sm:$0xff] %v2442_v26  ;;  %v627_v13 = vmul.f32 %v3182_v25, %v2428_v35  ;;  %v739_v7 = vmul.f32 %v3184_v12, %v2442_v26 }
 0x18e   : > { %v495_v56 = vsel %vm483_vm2, %v474_v2, %v2369_v24  ;;  %v551_v48 = vsel %vm548_vm5, %v521_v15, %v537_v55  ;;  %v744_v49 = vadd.f32 %v728_v1, %v680_v30  ;;  %v559_v28 = vsel %vm548_vm5, %v537_v55, %v521_v15 }
 0x18f   : > { %3178 = vst [vmem:[#allocation53_spill] sm:$0xff] %v2437_v37  ;;  %v2453_v44 = vadd.f32 %v841_v59, %v793_v21  ;;  %v3183_v59 = vld [vmem:[#allocation6_spill] sm:$0xff]  ;;  %v2470_v3 = vmul.f32 %v2205_v58, %v495_v56  ;;  %v569_v42 = vmul.f32 %v2265_v20, %v551_v48  ;;  %v1031_v37 = vadd.f32 %v2258_v22, %v967_v31 }
 0x190   : > { %v1079_v8 = vmul.f32 %v3183_v59, %v2377_v27  ;;  %v3185_v21 = vld [vmem:[#allocation2_spill] sm:$0xff]  ;;  %1175 = vrot.lane.b32.xlu0 %v744_v49, %s1681_s27  ;;  %v2485_v1 = vmul.f32 %v2285_v60, %v559_v28  ;;  %v691_v55 = vadd.f32 %v2271_v10, %v627_v13  ;;  %v1080_v31 = vmul.f32 %v3183_v59, %v2400_v36 }
 0x191   : > { %3181 = vst [vmem:[#allocation4_spill] sm:$0xff] %v2453_v44  ;;  %v539_v34 = vpop.permute.xlu1 %538  ;;  %v617_v63 = vmul.f32 %v3185_v21, %v2416_v9  ;;  %v1094_v44 = vadd.f32 %v1078_v62, %v1030_v41  ;;  %v487_v41 = vsel %vm483_vm2, %v2369_v24, %v474_v2  ;;  %v3186_v62 = vld [vmem:[#allocation13_spill] sm:$0xff]  ;;  %v3187_v56 = vld [vmem:[#allocation50_spill] sm:$0xff]  ;;  %v619_v48 = vmul.f32 %v3189_v11, %v2470_v3  ;;  %v2507_v49 = vpop.permute.xlu0 %459 }
 0x192   : > { %v552_v15 = vsel %vm548_vm5, %v2402_v50, %v539_v34  ;;  %v729_v22 = vmul.f32 %v3186_v62, %v569_v42  ;;  %v2496_v30 = vmul.f32 %v3187_v56, %v569_v42  ;;  %v2505_v10 = vmul.f32 %v3187_v56, %v2485_v1  ;;  %3191 = vst [vmem:[#allocation16_spill] sm:$0xff] %v2507_v49  ;;  %v3193_v58 = vld [vmem:[#allocation46_spill] sm:$0xff]  ;;  %v3194_v56 = vld [vmem:[#allocation28_spill] sm:$0xff] }
 0x193   : > { %1254 = vrot.lane.b32.xlu1 %v1094_v44, %s1682_s28  ;;  %v1095_v13 = vadd.f32 %v1079_v8, %v1031_v37  ;;  %v681_v2 = vadd.f32 %v2291_v14, %v617_v63  ;;  %v560_v44 = vsel %vm548_vm5, %v539_v34, %v2402_v50  ;;  %v2516_v59 = vmul.f32 %v2265_v20, %v552_v15  ;;  %v3195_v8 = vld [vmem:[#allocation59_spill] sm:$0xff]  ;;  %v3196_v34 = vld [vmem:[#allocation12_spill] sm:$0xff] }
 0x194   : > { %3188 = vst [vmem:[#allocation35_spill] sm:$0xff] %v2496_v30  ;;  %3190 = vst [vmem:[#allocation6_spill] sm:$0xff] %v2505_v10  ;;  %v755_v28 = vadd.f32 %v739_v7, %v691_v55  ;;  %v3192_v30 = vld [vmem:[#allocation19_spill] sm:$0xff]  ;;  %v838_v37 = vmul.f32 %v3193_v58, %v3194_v56  ;;  %v1032_v10 = vadd.f32 %v3195_v8, %v968_v52 }
 0x195   : > { %v2509_v24 = vpop.permute.xlu1 %461  ;;  %v2520_v26 = vmul.f32 %v3193_v58, %v3192_v30  ;;  %v507_v49 = vmul.f32 %v2223_v45, %v487_v41  ;;  %1240 = vrot.lane.b32.xlu0 %v1095_v13, %s1682_s28  ;;  %v626_v14 = vmul.f32 %v1907_v38, %v2456_v43  ;;  %v618_v50 = vmul.f32 %v3185_v21, %v2419_v57  ;;  %v3197_v21 = vld [vmem:[#allocation51_spill] sm:$0xff]  ;;  %v3198_v30 = vld [vmem:[#allocation36_spill] sm:$0xff] }
 0x196   : > { %v731_v7 = vmul.f32 %v3196_v34, %v2516_v59  ;;  %v745_v63 = vadd.f32 %v729_v22, %v681_v2  ;;  %v2536_v58 = vmul.f32 %v2163_v4, %v2078_v19  ;;  %v683_v52 = vadd.f32 %v2319_v39, %v619_v48  ;;  %v3199_v39 = vld [vmem:[#allocation45_spill] sm:$0xff] }
 0x197   : > { %1171 = vrot.lane.b32.xlu1 %v755_v28, %s1681_s27  ;;  %v2540_v15 = vmul.f32 %v2285_v60, %v560_v44  ;;  %v1096_v55 = vadd.f32 %v1080_v31, %v1032_v10  ;;  %v789_v41 = vmul.f32 %v3197_v21, %v2244_v61  ;;  %v977_v13 = vmul.f32 %v3198_v30, %v2282_v54  ;;  %v2560_v61 = vpop.permute.xlu0 %524 }
 0x198   : > { %v628_v22 = vmul.f32 %v3182_v25, %v2481_v33  ;;  %v730_v19 = vmul.f32 %v3186_v62, %v2485_v1  ;;  %v790_v4 = vmul.f32 %v3197_v21, %v2294_v46  ;;  %v2556_v31 = vmul.f32 %v3199_v39, %v2350_v51  ;;  %v3200_v25 = vld [vmem:[#allocation39_spill] sm:$0xff]  ;;  %v3201_v46 = vld [vmem:[#allocation9_spill] sm:$0xff] }
 0x199   : > { %v2542_v38 = vpop.permute.xlu1 %526  ;;  %v620_v48 = vmul.f32 %v3189_v11, %v507_v49  ;;  %1256 = vrot.lane.b32.xlu0 %v1096_v55, %s1682_s28  ;;  %v747_v10 = vadd.f32 %v731_v7, %v683_v52  ;;  %v2563_v2 = vadd.f32 %v2360_v0, %v626_v14  ;;  %v979_v62 = vmul.f32 %v3200_v25, %v2428_v35  ;;  %v3202_v11 = vld [vmem:[#allocation49_spill] sm:$0xff]  ;;  %v3203_v14 = vld [vmem:[#allocation47_spill] sm:$0xff] }
 0x19a   : > { %v682_v44 = vadd.f32 %v2311_v47, %v618_v50  ;;  %v969_v28 = vmul.f32 %v3201_v46, %v2416_v9  ;;  %v564_v51 = vsel %vm548_vm5, %v2307_v5, %v2198_v29  ;;  %v795_v56 = vmul.f32 %v3202_v11, %v2470_v3  ;;  %v3204_v50 = vld [vmem:[#allocation60_spill] sm:$0xff]  ;;  %v3205_v9 = vld [vmem:[#allocation61_spill] sm:$0xff]  ;;  %v3206_v52 = vld [vmem:[#allocation15_spill] sm:$0xff] }
 0x19b   : > { %1161 = vrot.lane.b32.xlu1 %v745_v63, %s1681_s27  ;;  %v732_v0 = vmul.f32 %v3196_v34, %v2540_v15  ;;  %v902_v47 = vmul.f32 %v3203_v14, %v2322_v17  ;;  %v2582_v7 = vadd.f32 %v3204_v50, %v977_v13  ;;  %v692_v63 = vadd.f32 %v3205_v9, %v628_v22  ;;  %v3207_v5 = vld [vmem:[#allocation65_spill] sm:$0xff]  ;;  %v3208_v34 = vld [vmem:[#allocation11_spill] sm:$0xff]  ;;  %v3213_v9 = vld [vmem:[#allocation66_spill] sm:$0xff] }
 0x19c   : > { %v1081_v55 = vmul.f32 %v3206_v52, %v569_v42  ;;  %v746_v21 = vadd.f32 %v730_v19, %v682_v44  ;;  %v563_v29 = vsel %vm548_vm5, %v2267_v6, %v2192_v53  ;;  %v684_v39 = vadd.f32 %v3207_v5, %v620_v48  ;;  %v3209_v19 = vld [vmem:[#allocation63_spill] sm:$0xff]  ;;  %v3210_v53 = vld [vmem:[#allocation17_spill] sm:$0xff] }
 0x19d   : > { %v478_v8 = vpop.permute.xlu1 %477  ;;  %v971_v54 = vmul.f32 %v3208_v34, %v2470_v3  ;;  %1163 = vrot.lane.b32.xlu0 %v747_v10, %s1681_s27  ;;  %v854_v17 = vadd.f32 %v838_v37, %v790_v4  ;;  %v2595_v13 = vadd.f32 %v2364_v23, %v979_v62  ;;  %v2598_v22 = vmul.f32 %v2285_v60, %v564_v51  ;;  %v476_v3 = vpop.permute.xlu0 %475  ;;  %v3211_v37 = vld [vmem:[#allocation26_spill] sm:$0xff] }
 0x19e   : > { %v970_v42 = vmul.f32 %v3201_v46, %v2419_v57  ;;  %v1033_v44 = vadd.f32 %v3209_v19, %v969_v28  ;;  %v1083_v6 = vmul.f32 %v3210_v53, %v2516_v59  ;;  %v748_v48 = vadd.f32 %v732_v0, %v684_v39  ;;  %v3212_v28 = vld [vmem:[#allocation48_spill] sm:$0xff] }
 0x19f   : > { %1177 = vrot.lane.b32.xlu1 %v746_v21, %s1681_s27  ;;  %v2606_v10 = vadd.f32 %v902_v47, %v854_v17  ;;  %v859_v23 = vadd.f32 %v3211_v37, %v795_v56  ;;  %v2610_v4 = vmul.f32 %v2285_v60, %v563_v29  ;;  %v972_v62 = vmul.f32 %v3208_v34, %v507_v49  ;;  %v3214_v29 = vld [vmem:[#allocation43_spill] sm:$0xff] }
 0x1a0   : > { %v1082_v57 = vmul.f32 %v3206_v52, %v2485_v1  ;;  %v1097_v46 = vadd.f32 %v1081_v55, %v1033_v44  ;;  %v903_v51 = vmul.f32 %v3212_v28, %v2377_v27  ;;  %v796_v50 = vmul.f32 %v3202_v11, %v507_v49  ;;  %v3215_v27 = vld [vmem:[#allocation64_spill] sm:$0xff] }
 0x1a1   : > { %v1035_v0 = vadd.f32 %v3213_v9, %v971_v54  ;;  %1179 = vrot.lane.b32.xlu0 %v748_v48, %s1681_s27  ;;  %v543_v47 = vpop.permute.xlu1 %542  ;;  %v901_v56 = vmul.f32 %v3203_v14, %v2299_v40  ;;  %v904_v21 = vmul.f32 %v3212_v28, %v2400_v36  ;;  %v1089_v1 = vmul.f32 %v3214_v29, %v2367_v32  ;;  %v3216_v14 = vld [vmem:[#allocation67_spill] sm:$0xff]  ;;  %v541_v34 = vpop.permute.xlu0 %540  ;;  %v3218_v44 = vld [vmem:[#allocation52_spill] sm:$0xff] }
 0x1a2   : > { %v740_v52 = vmul.f32 %v3184_v12, %v2598_v22  ;;  %v1034_v55 = vadd.f32 %v3215_v27, %v970_v42  ;;  %v1084_v54 = vmul.f32 %v3210_v53, %v2540_v15  ;;  %v497_v40 = vsel %vm483_vm2, %v478_v8, %v2509_v24  ;;  %v3217_v42 = vld [vmem:[#allocation27_spill] sm:$0xff]  ;;  %v3220_v53 = vld [vmem:[#allocation44_spill] sm:$0xff]  ;;  %v3224_v27 = vld [vmem:[#allocation18_spill] sm:$0xff] }
 0x1a3   : > { %1242 = vrot.lane.b32.xlu1 %v1097_v46, %s1682_s28  ;;  %v1099_v49 = vadd.f32 %v1083_v6, %v1035_v0  ;;  %v853_v36 = vadd.f32 %v2520_v26, %v789_v41  ;;  %v738_v11 = vmul.f32 %v2120_v16, %v2610_v4  ;;  %v1036_v5 = vadd.f32 %v3216_v14, %v972_v62  ;;  %v3219_v41 = vld [vmem:[#allocation69_spill] sm:$0xff]  ;;  %v3221_v48 = vld [vmem:[#allocation16_spill] sm:$0xff] }
 0x1a4   : > { %v554_v12 = vsel %vm548_vm5, %v2542_v38, %v543_v47  ;;  %v1098_v39 = vadd.f32 %v1082_v57, %v1034_v55  ;;  %v860_v19 = vadd.f32 %v3217_v42, %v796_v50  ;;  %v907_v26 = vmul.f32 %v3218_v44, %v2516_v59  ;;  %v3222_v57 = vld [vmem:[#allocation57_spill] sm:$0xff] }
 0x1a5   : > { %1244 = vrot.lane.b32.xlu0 %v1099_v49, %s1682_s28  ;;  %v2643_v17 = vadd.f32 %v901_v56, %v853_v36  ;;  %v908_v16 = vmul.f32 %v3218_v44, %v2540_v15  ;;  %v1091_v6 = vmul.f32 %v3220_v53, %v3219_v41  ;;  %v496_v37 = vsel %vm483_vm2, %v476_v3, %v3221_v48  ;;  %v3227_v36 = vld [vmem:[#allocation4_spill] sm:$0xff]  ;;  %v3231_v44 = vld [vmem:[#allocation3_spill] sm:$0xff] }
 0x1a6   : > { %v489_v62 = vsel %vm483_vm2, %v2509_v24, %v478_v8  ;;  %v510_v46 = vmul.f32 %v3222_v57, %v497_v40  ;;  %v1100_v28 = vadd.f32 %v1084_v54, %v1036_v5  ;;  %v756_v59 = vadd.f32 %v740_v52, %v692_v63  ;;  %v3225_v54 = vld [vmem:[#allocation58_spill] sm:$0xff] }
 0x1a7   : > { %1258 = vrot.lane.b32.xlu1 %v1098_v39, %s1682_s28  ;;  %v2660_v50 = vadd.f32 %v907_v26, %v859_v23  ;;  %v2662_v15 = vadd.f32 %v908_v16, %v860_v19  ;;  %v488_v9 = vsel %vm483_vm2, %v3221_v48, %v476_v3  ;;  %v553_v0 = vsel %vm548_vm5, %v2560_v61, %v541_v34  ;;  %v3223_v3 = vld [vmem:[#allocation22_spill] sm:$0xff]  ;;  %v3232_v26 = vld [vmem:[#allocation37_spill] sm:$0xff]  ;;  %v3233_v16 = vld [vmem:[#allocation20_spill] sm:$0xff] }
 0x1a8   : > { %v2671_v24 = vmul.f32 %v2265_v20, %v554_v12  ;;  %v754_v8 = vadd.f32 %v738_v11, %v2563_v2  ;;  %v508_v56 = vmul.f32 %v3222_v57, %v496_v37  ;;  %v511_v63 = vmul.f32 %v2223_v45, %v489_v62  ;;  %v3226_v2 = vld [vmem:[#allocation53_spill] sm:$0xff]  ;;  %v3228_v11 = vld [vmem:[#allocation35_spill] sm:$0xff]  ;;  %v3230_v19 = vld [vmem:[#allocation6_spill] sm:$0xff] }
 0x1a9   : > { %v562_v23 = vsel %vm548_vm5, %v543_v47, %v2542_v38  ;;  %1260 = vrot.lane.b32.xlu0 %v1100_v28, %s1682_s28  ;;  %v856_v52 = vadd.f32 %v3223_v3, %v2556_v31  ;;  %v623_v55 = vmul.f32 %v3224_v27, %v510_v46  ;;  %v2685_v40 = vadd.f32 %v903_v51, %v3225_v54  ;;  %v3235_v28 = vld [vmem:[#allocation32_spill] sm:$0xff]  ;;  %v3237_v3 = vld [vmem:[#allocation5_spill] sm:$0xff] }
 0x1aa   : > { %v858_v49 = vadd.f32 %v2536_v58, %v3226_v2  ;;  %v2691_v14 = vadd.f32 %v3228_v11, %v3227_v36  ;;  %v2694_v38 = vmul.f32 %v2223_v45, %v488_v9  ;;  %v573_v47 = vmul.f32 %v2265_v20, %v553_v0  ;;  %v3229_v58 = vld [vmem:[#allocation14_spill] sm:$0xff]  ;;  %v3239_v36 = vld [vmem:[#allocation41_spill] sm:$0xff] }
 0x1ab   : > { %1187 = vrot.lane.b32.xlu1 %v756_v59, %s1681_s27  ;;  %v1107_v31 = vadd.f32 %v1091_v6, %v2595_v13  ;;  %v2698_v5 = vadd.f32 %v904_v21, %v856_v52  ;;  %v561_v51 = vsel %vm548_vm5, %v541_v34, %v2560_v61  ;;  %v2704_v12 = vmul.f32 %v2285_v60, %v562_v23  ;;  %v3234_v34 = vld [vmem:[#allocation68_spill] sm:$0xff]  ;;  %v3236_v23 = vld [vmem:[#allocation42_spill] sm:$0xff] }
 0x1ac   : > { %v735_v39 = vmul.f32 %v3229_v58, %v2671_v24  ;;  %v779_v42 = vpop.permute.xlu0 %778  ;;  %v2709_v45 = vadd.f32 %v3230_v19, %v858_v49  ;;  %v621_v20 = vmul.f32 %v3231_v44, %v508_v56  ;;  %v669_v6 = vmul.f32 %v3233_v16, %v3232_v26 }
 0x1ad   : > { %1185 = vrot.lane.b32.xlu0 %v754_v8, %s1681_s27  ;;  %v799_v13 = vmul.f32 %v779_v42, %v510_v46  ;;  %v800_v21 = vmul.f32 %v779_v42, %v511_v63  ;;  %v624_v61 = vmul.f32 %v3224_v27, %v511_v63  ;;  %v687_v48 = vadd.f32 %v3234_v34, %v623_v55  ;;  %v3242_v42 = vld [vmem:[#allocation29_spill] sm:$0xff] }
 0x1ae   : > { %v1105_v37 = vadd.f32 %v1089_v1, %v2582_v7  ;;  %v574_v57 = vmul.f32 %v2285_v60, %v561_v51  ;;  %v733_v59 = vmul.f32 %v3235_v28, %v573_v47  ;;  %v622_v8 = vmul.f32 %v3231_v44, %v2694_v38  ;;  %v3238_v1 = vld [vmem:[#allocation25_spill] sm:$0xff] }
 0x1af   : > { %1252 = vrot.lane.b32.xlu1 %v1107_v31, %s1682_s28  ;;  %v775_v62 = vpop.permute.xlu1 %774  ;;  %v672_v52 = vmul.f32 %v3237_v3, %v3236_v23  ;;  %v736_v27 = vmul.f32 %v3229_v58, %v2704_v12  ;;  %v751_v55 = vadd.f32 %v735_v39, %v687_v48  ;;  %v685_v7 = vadd.f32 %v669_v6, %v621_v20  ;;  %v3240_v31 = vld [vmem:[#allocation8_spill] sm:$0xff]  ;;  %v3241_v39 = vld [vmem:[#allocation38_spill] sm:$0xff] }
 0x1b0   : > { %v797_v9 = vmul.f32 %v775_v62, %v508_v56  ;;  %v798_v0 = vmul.f32 %v775_v62, %v2694_v38  ;;  %v787_v54 = vpop.permute.xlu0 %786  ;;  %v975_v2 = vmul.f32 %v3238_v1, %v510_v46  ;;  %v670_v11 = vmul.f32 %v3233_v16, %v3239_v36  ;;  %v3244_v62 = vld [vmem:[#allocation24_spill] sm:$0xff] }
 0x1b1   : > { %1250 = vrot.lane.b32.xlu0 %v1105_v37, %s1682_s28  ;;  %v2731_v60 = vmul.f32 %v787_v54, %v2428_v35  ;;  %v2734_v49 = vmul.f32 %v787_v54, %v2481_v33  ;;  %v1021_v51 = vmul.f32 %v3240_v31, %v3232_v26  ;;  %v688_v58 = vadd.f32 %v672_v52, %v624_v61  ;;  %v3243_v35 = vld [vmem:[#allocation34_spill] sm:$0xff] }
 0x1b2   : > { %v1023_v46 = vmul.f32 %v3242_v42, %v3241_v39  ;;  %v734_v19 = vmul.f32 %v3235_v28, %v574_v57  ;;  %v1087_v44 = vmul.f32 %v3243_v35, %v2671_v24  ;;  %v749_v20 = vadd.f32 %v733_v59, %v685_v7 }
 0x1b3   : > { %1167 = vrot.lane.b32.xlu1 %v751_v55, %s1681_s27  ;;  %v1024_v34 = vmul.f32 %v3242_v42, %v3236_v23  ;;  %v752_v16 = vadd.f32 %v736_v27, %v688_v58  ;;  %v686_v37 = vadd.f32 %v670_v11, %v622_v8  ;;  %v973_v3 = vmul.f32 %v3244_v62, %v508_v56  ;;  %v3245_v27 = vld [vmem:[#allocation33_spill] sm:$0xff] }
 0x1b4   : > { %v823_v6 = vpop.permute.xlu1 %822  ;;  %v976_v52 = vmul.f32 %v3238_v1, %v511_v63  ;;  %v1039_v55 = vadd.f32 %v1023_v46, %v975_v2  ;;  %v1085_v58 = vmul.f32 %v3245_v27, %v573_v47 }
 0x1b5   : > { %v845_v48 = vmul.f32 %v823_v6, %v3232_v26  ;;  %v846_v61 = vmul.f32 %v823_v6, %v3239_v36  ;;  %1165 = vrot.lane.b32.xlu0 %v749_v20, %s1681_s27  ;;  %v887_v28 = vpop.permute.xlu0 %886  ;;  %v1088_v26 = vmul.f32 %v3243_v35, %v2704_v12  ;;  %v750_v8 = vadd.f32 %v734_v19, %v686_v37 }
 0x1b6   : > { %v909_v7 = vmul.f32 %v887_v28, %v573_v47  ;;  %v910_v42 = vmul.f32 %v887_v28, %v574_v57  ;;  %v1103_v11 = vadd.f32 %v1087_v44, %v1039_v55  ;;  %v974_v47 = vmul.f32 %v3244_v62, %v2694_v38  ;;  %v3246_v38 = vld [vmem:[#allocation31_spill] sm:$0xff] }
 0x1b7   : > { %1183 = vrot.lane.b32.xlu1 %v752_v16, %s1681_s27  ;;  %v861_v59 = vadd.f32 %v845_v48, %v797_v9  ;;  %v862_v54 = vadd.f32 %v846_v61, %v798_v0  ;;  %v980_v9 = vmul.f32 %v3200_v25, %v2481_v33  ;;  %v1037_v0 = vadd.f32 %v1021_v51, %v973_v3  ;;  %v3247_v51 = vld [vmem:[#allocation40_spill] sm:$0xff] }
 0x1b8   : > { %v827_v56 = vpop.permute.xlu1 %826  ;;  %v1040_v20 = vadd.f32 %v1024_v34, %v976_v52  ;;  %v1022_v6 = vmul.f32 %v3240_v31, %v3239_v36  ;;  %v1086_v33 = vmul.f32 %v3245_v27, %v574_v57  ;;  %v1028_v34 = vmul.f32 %v3247_v51, %v3246_v38  ;;  %v3248_v57 = vld [vmem:[#allocation30_spill] sm:$0xff]  ;;  %v3251_v27 = vld [vmem:[#allocation21_spill] sm:$0xff] }
 0x1b9   : > { %v847_v63 = vmul.f32 %v827_v56, %v3241_v39  ;;  %v848_v1 = vmul.f32 %v827_v56, %v3236_v23  ;;  %v2759_v2 = vadd.f32 %v909_v7, %v861_v59  ;;  %v2761_v46 = vadd.f32 %v910_v42, %v862_v54  ;;  %1181 = vrot.lane.b32.xlu0 %v750_v8, %s1681_s27  ;;  %v895_v19 = vpop.permute.xlu0 %894  ;;  %v3249_v31 = vld [vmem:[#allocation10_spill] sm:$0xff] }
 0x1ba   : > { %v913_v23 = vmul.f32 %v895_v19, %v2367_v32  ;;  %v914_v44 = vmul.f32 %v895_v19, %v2610_v4  ;;  %v1101_v25 = vadd.f32 %v1085_v58, %v1037_v0  ;;  %v1092_v16 = vmul.f32 %v3220_v53, %v2598_v22  ;;  %v3250_v54 = vld [vmem:[#allocation62_spill] sm:$0xff] }
 0x1bb   : > { %1248 = vrot.lane.b32.xlu1 %v1103_v11, %s1682_s28  ;;  %v863_v39 = vadd.f32 %v847_v63, %v799_v13  ;;  %v864_v35 = vadd.f32 %v848_v1, %v800_v21  ;;  %v1104_v48 = vadd.f32 %v1088_v26, %v1040_v20  ;;  %v978_v13 = vmul.f32 %v3198_v30, %v2456_v43  ;;  %v3252_v63 = vld [vmem:[#allocation23_spill] sm:$0xff] }
 0x1bc   : > { %v1038_v32 = vadd.f32 %v1022_v6, %v974_v47  ;;  %v1026_v37 = vmul.f32 %v3249_v31, %v3248_v57  ;;  %v1044_v62 = vadd.f32 %v1028_v34, %v980_v9  ;;  %v1090_v53 = vmul.f32 %v3214_v29, %v2610_v4  ;;  %v1405_v4 = vld [vmem:[%s3026_s4] sm:$0xff]  ;;  %v1406_v29 = vld [vmem:[%s3026_s4 + $0x8] sm:$0xff]  ;;  %v3254_v31 = vld [vmem:[#allocation56_spill] sm:$0xff] }
 0x1bd   : > { %v891_v61 = vpop.permute.xlu1 %890  ;;  %1246 = vrot.lane.b32.xlu0 %v1101_v25, %s1682_s28  ;;  %vm446_vm9 = vcmp.lt.s32.totalorder %v3254_v31, 240 }
 0x1be   : > { %v911_v21 = vmul.f32 %v891_v61, %v2671_v24  ;;  %v912_v36 = vmul.f32 %v891_v61, %v2704_v12  ;;  %v1102_v3 = vadd.f32 %v1086_v33, %v1038_v32  ;;  %v1108_v55 = vadd.f32 %v1092_v16, %v1044_v62 }
 0x1bf   : > { %1264 = vrot.lane.b32.xlu1 %v1104_v48, %s1682_s28  ;;  %v1042_v28 = vadd.f32 %v1026_v37, %v978_v13  ;;  %v3253_v61 = vmov 0.0  }
 0x1c0   : > { %v2788_v52 = vadd.f32 %v911_v21, %v863_v39  ;;  %v2790_v30 = vadd.f32 %v912_v36, %v864_v35  ;;  %v2837_v13 = vsel %vm439_vm7, 1.0, %v3253_v61 }
 0x1c1   : > { %1262 = vrot.lane.b32.xlu0 %v1102_v3, %s1682_s28  ;;  %v1106_v12 = vadd.f32 %v1090_v53, %v1042_v28  ;;  %v2848_v3 = vsel %vm446_vm9, 1.0, %v3253_v61 }
 0x1c2   : > { %v783_v24 = vpop.permute.xlu1 %782 }
 0x1c3   : > { %1268 = vrot.lane.b32.xlu1 %v1108_v55, %s1682_s28  ;;  %v801_v7 = vmul.f32 %v783_v24, %v3250_v54  ;;  %v802_v42 = vmul.f32 %v783_v24, %v2456_v43 }
 0x1c5   : > { %1266 = vrot.lane.b32.xlu0 %v1106_v12, %s1682_s28 }
 0x1c7   : > { %v831_v59 = vpop.permute.xlu1 %830  ;;  %1414 = vperm.xlu1 %1634, %v1406_v29  }
 0x1c8   : > { %v849_v58 = vmul.f32 %v831_v59, %v3251_v27  ;;  %v850_v26 = vmul.f32 %v831_v59, %v3248_v57 }
 0x1c9   : > { %1409 = vperm.xlu0 %1633, %v1405_v4  }
 0x1ca   : > { %v865_v8 = vadd.f32 %v849_v58, %v801_v7  ;;  %v866_v11 = vadd.f32 %v850_v26, %v802_v42  ;;  %v3255_v26 = vld [vmem:[#allocation54_spill] sm:$0xff] }
 0x1cb   : > { %v835_v56 = vpop.permute.xlu1 %834 }
 0x1cc   : > { %v851_v1 = vmul.f32 %v835_v56, %v3252_v63  ;;  %v852_v9 = vmul.f32 %v835_v56, %v3246_v38  ;;  %v929_v47 = vadd.f32 %v913_v23, %v865_v8  ;;  %v930_v0 = vadd.f32 %v914_v44, %v866_v11 }
 0x1cd   : > { %v1143_v8 = vadd.f32 %v3255_v26, %v2685_v40 }
 0x1ce   : > { %v867_v20 = vadd.f32 %v851_v1, %v2731_v60  ;;  %v868_v19 = vadd.f32 %v852_v9, %v2734_v49 }
 0x1d0   : > { %v899_v43 = vpop.permute.xlu1 %898 }
 0x1d1   : > { %v915_v39 = vmul.f32 %v899_v43, %v3219_v41  ;;  %v916_v35 = vmul.f32 %v899_v43, %v2598_v22  ;;  %v1111_v22 = vpop.permute.xlu0 %1110 }
 0x1d2   : > { %v1141_v37 = vadd.f32 %v1111_v22, %v2643_v17  ;;  %v1142_v4 = vadd.f32 %v1111_v22, %v2606_v10  ;;  %v1144_v10 = vadd.f32 %v3255_v26, %v2698_v5 }
 0x1d3   : > { %v931_v6 = vadd.f32 %v915_v39, %v867_v20  ;;  %v2811_v33 = vadd.f32 %v916_v35, %v868_v19 }
 0x1d5   : > { %v1127_v25 = vpop.permute.xlu1 %1126  ;;  %v2828_v34 = vpop.permute.xlu0 %1122 }
 0x1d6   : > { %v2814_v51 = vadd.f32 %v1127_v25, %v2759_v2  ;;  %v2817_v38 = vadd.f32 %v1127_v25, %v2761_v46 }
 0x1d9   : > { %v1135_v23 = vpop.permute.xlu1 %1134  ;;  %v2830_v16 = vpop.permute.xlu0 %1130 }
 0x1da   : > { %v2819_v44 = vadd.f32 %v1135_v23, %v929_v47  ;;  %v2821_v60 = vadd.f32 %v1135_v23, %v930_v0 }
 0x1dd   : > { %v2823_v49 = vpop.permute.xlu1 %1138 }
 0x1de   : > { %v2826_v41 = vadd.f32 %v2823_v49, %v931_v6 }
 0x1f6   : > { %v1158_v2 = vpop.permute.xlu1 %1157 }
 0x1f9   : > { %v2834_v46 = vpop.permute.xlu0 %1169 }
 0x1fa   : > { %v1174_v48 = vpop.permute.xlu1 %1173 }
 0x1fb   : > { %v1198_v32 = vsel %vm1189_vm8, %v1174_v48, %v1158_v2  ;;  %v1190_v17 = vsel %vm1189_vm8, %v1158_v2, %v1174_v48 }
 0x1fc   : > { %v1206_v36 = vmul.f32 %v2837_v13, %v1198_v32  ;;  %v1223_v58 = vadd.f32 %v1190_v17, %v1142_v4 }
 0x1fd   : > { %v1160_v21 = vpop.permute.xlu0 %1159 }
 0x1fe   : > { %v1239_v57 = vpop.permute.xlu1 %1238  ;;  %v1222_v55 = vadd.f32 %v1206_v36, %v1141_v37 }
 0x202   : > { %v1176_v62 = vpop.permute.xlu0 %1175 }
 0x203   : > { %v1199_v53 = vsel %vm1189_vm8, %v1176_v62, %v1160_v21  ;;  %v1191_v11 = vsel %vm1189_vm8, %v1160_v21, %v1176_v62 }
 0x204   : > { %v1208_v29 = vmul.f32 %v2837_v13, %v1199_v53  ;;  %v1225_v40 = vadd.f32 %v1191_v11, %v1144_v10 }
 0x205   : > { %v1255_v28 = vpop.permute.xlu1 %1254 }
 0x206   : > { %v1271_v24 = vsel %vm1270_vm10, %v1239_v57, %v1255_v28  ;;  %v1279_v12 = vsel %vm1270_vm10, %v1255_v28, %v1239_v57  ;;  %v1224_v1 = vadd.f32 %v1208_v29, %v1143_v8  ;;  %v3256_v28 = vld [vmem:[#allocation55_spill] sm:$0xff] }
 0x207   : > { %v2856_v59 = vadd.f32 %v1271_v24, %v1222_v55  ;;  %v1288_v54 = vmul.f32 %v2848_v3, %v1279_v12  ;;  %v1241_v7 = vpop.permute.xlu0 %1240  ;;  %v1145_v24 = vadd.f32 %v3256_v28, %v2691_v14  ;;  %v1146_v4 = vadd.f32 %v3256_v28, %v2709_v45 }
 0x209   : > { %v1327_v42 = vmul.f32 %v2856_v59, %v2856_v59  ;;  %v2863_v27 = vpop.permute.xlu1 %1171  ;;  %v2871_v56 = vadd.f32 %v1288_v54, %v1223_v58 }
 0x20b   : > { %v1335_v63 = vmul.f32 %v1327_v42, %v2856_v59  ;;  %v1257_v9 = vpop.permute.xlu0 %1256  ;;  %v1328_v5 = vmul.f32 %v2871_v56, %v2871_v56 }
 0x20c   : > { %v1272_v47 = vsel %vm1270_vm10, %v1241_v7, %v1257_v9  ;;  %v1280_v0 = vsel %vm1270_vm10, %v1257_v9, %v1241_v7  ;;  %v1147_v7 = vadd.f32 %v2828_v34, %v2660_v50  ;;  %v1148_v50 = vadd.f32 %v2828_v34, %v2662_v15 }
 0x20d   : > { %v1162_v20 = vpop.permute.xlu1 %1161  ;;  %v1290_v19 = vmul.f32 %v2848_v3, %v1280_v0  ;;  %v2879_v43 = vadd.f32 %v1272_v47, %v1224_v1  ;;  %v1343_v39 = vmul.f32 0.044715, %v1335_v63  ;;  %v1336_v61 = vmul.f32 %v1328_v5, %v2871_v56 }
 0x20f   : > { %v2883_v35 = vadd.f32 %v1290_v19, %v1225_v40  ;;  %v1329_v6 = vmul.f32 %v2879_v43, %v2879_v43  ;;  %v1164_v25 = vpop.permute.xlu0 %1163  ;;  %v1351_v32 = vadd.f32 %v1343_v39, %v2856_v59  ;;  %v1344_v12 = vmul.f32 0.044715, %v1336_v61 }
 0x211   : > { %v1178_v23 = vpop.permute.xlu1 %1177  ;;  %v1330_v22 = vmul.f32 %v2883_v35, %v2883_v35  ;;  %v1337_v2 = vmul.f32 %v1329_v6, %v2879_v43  ;;  %v1359_v17 = vmul.f32 0.7978846, %v1351_v32  ;;  %v1352_v9 = vadd.f32 %v1344_v12, %v2871_v56 }
 0x212   : > { %v1200_v48 = vsel %vm1189_vm8, %v1178_v23, %v1162_v20  ;;  %v1192_v55 = vsel %vm1189_vm8, %v1162_v20, %v1178_v23 }
 0x213   : > { %v1338_v21 = vmul.f32 %v1330_v22, %v2883_v35  ;;  %v1180_v36 = vpop.permute.xlu0 %1179  ;;  %v1210_v57 = vmul.f32 %v2837_v13, %v1200_v48  ;;  %v1345_v62 = vmul.f32 0.044715, %v1337_v2  ;;  %v1227_v8 = vadd.f32 %v1192_v55, %v1146_v4 }
 0x214   : > { %v1201_v31 = vsel %vm1189_vm8, %v1180_v36, %v1164_v25  ;;  %v1193_v45 = vsel %vm1189_vm8, %v1164_v25, %v1180_v36  ;;  %1643 = vtanh.f32 %v1359_v17 }
 0x215   : > { %v1243_v37 = vpop.permute.xlu1 %1242  ;;  %v1346_v53 = vmul.f32 0.044715, %v1338_v21  ;;  %v1212_v29 = vmul.f32 %v2837_v13, %v1201_v31  ;;  %v1226_v42 = vadd.f32 %v1210_v57, %v1145_v24  ;;  %v1353_v26 = vadd.f32 %v1345_v62, %v2879_v43 }
 0x216   : > { %v1229_v25 = vadd.f32 %v1193_v45, %v1148_v50  ;;  %v1360_v21 = vmul.f32 0.7978846, %v1352_v9  ;;  %v1152_v50 = vadd.f32 %v2830_v16, %v2790_v30 }
 0x217   : > { %v1245_v54 = vpop.permute.xlu0 %1244  ;;  %v1354_v10 = vadd.f32 %v1346_v53, %v2883_v35  ;;  %v1228_v47 = vadd.f32 %v1212_v29, %v1147_v7  ;;  %v1361_v6 = vmul.f32 0.7978846, %v1353_v26 }
 0x219   : > { %v1259_v58 = vpop.permute.xlu1 %1258  ;;  %v1362_v2 = vmul.f32 0.7978846, %v1354_v10  ;;  %1645 = vtanh.f32 %v1361_v6  ;;  %v1151_v10 = vadd.f32 %v2830_v16, %v2788_v52 }
 0x21a   : > { %v1273_v11 = vsel %vm1270_vm10, %v1243_v37, %v1259_v58  ;;  %v1281_v14 = vsel %vm1270_vm10, %v1259_v58, %v1243_v37 }
 0x21b   : > { %v1292_v63 = vmul.f32 %v2848_v3, %v1281_v14  ;;  %v2916_v1 = vadd.f32 %v1273_v11, %v1226_v42  ;;  %v1261_v0 = vpop.permute.xlu0 %1260  ;;  %1647 = vtanh.f32 %v1362_v2  ;;  %v1321_v2 = vmul.f32 0.5, %v2879_v43 }
 0x21c   : > { %v1274_v19 = vsel %vm1270_vm10, %v1245_v54, %v1261_v0  ;;  %v1282_v5 = vsel %vm1270_vm10, %v1261_v0, %v1245_v54  ;;  %1649 = vtanh.f32 %v1360_v21 }
 0x21d   : > { %v2921_v20 = vadd.f32 %v1292_v63, %v1227_v8  ;;  %v1331_v40 = vmul.f32 %v2916_v1, %v2916_v1  ;;  %v1188_v39 = vpop.permute.xlu1 %1187  ;;  %v1294_v15 = vmul.f32 %v2848_v3, %v1282_v5  ;;  %v1309_v34 = vadd.f32 %v1274_v19, %v1228_v47 }
 0x21e   : > { %v1644_v54 = vpop.eup %1643  ;;  %v1205_v8 = vsel %vm1189_vm8, %v1188_v39, %v2863_v27  ;;  %v1197_v0 = vsel %vm1189_vm8, %v2863_v27, %v1188_v39  ;;  %v1156_v5 = vadd.f32 %v2823_v49, %v2811_v33 }
 0x21f   : > { %v1332_v23 = vmul.f32 %v2921_v20, %v2921_v20  ;;  %v1339_v22 = vmul.f32 %v1331_v40, %v2916_v1  ;;  %v2933_v48 = vadd.f32 %v1294_v15, %v1229_v25  ;;  %v1333_v61 = vmul.f32 %v1309_v34, %v1309_v34  ;;  %v1186_v32 = vpop.permute.xlu0 %1185 }
 0x220   : > { %v1204_v45 = vsel %vm1189_vm8, %v1186_v32, %v2834_v46  ;;  %v1220_v40 = vmul.f32 %v2837_v13, %v1205_v8  ;;  %v1375_v52 = vadd.f32 1.0, %v1644_v54  ;;  %v1196_v30 = vsel %vm1189_vm8, %v2834_v46, %v1186_v32 }
 0x221   : > { %v1340_v36 = vmul.f32 %v1332_v23, %v2921_v20  ;;  %v1347_v57 = vmul.f32 0.044715, %v1339_v22  ;;  %v2936_v31 = vpop.permute.xlu1 %1252  ;;  %v1334_v37 = vmul.f32 %v2933_v48, %v2933_v48  ;;  %v1341_v62 = vmul.f32 %v1333_v61, %v1309_v34 }
 0x222   : > { %v1218_v16 = vmul.f32 %v2837_v13, %v1204_v45  ;;  %v1319_v23 = vmul.f32 0.5, %v2856_v59  ;;  %v1320_v22 = vmul.f32 0.5, %v2871_v56  ;;  %v1237_v49 = vadd.f32 %v1197_v0, %v1156_v5 }
 0x223   : > { %v1348_v53 = vmul.f32 0.044715, %v1340_v36  ;;  %v1355_v55 = vadd.f32 %v1347_v57, %v2916_v1  ;;  %v1342_v28 = vmul.f32 %v1334_v37, %v2933_v48  ;;  %v1349_v24 = vmul.f32 0.044715, %v1341_v62  ;;  %v2942_v12 = vpop.permute.xlu0 %1250  ;;  %v1646_v19 = vpop.eup %1645 }
 0x224   : > { %v1325_v46 = vmul.f32 0.5, %v1309_v34  ;;  %v1322_v61 = vmul.f32 0.5, %v2883_v35  ;;  %v1235_v32 = vadd.f32 %v1196_v30, %v2821_v60  ;;  %v1377_v21 = vadd.f32 1.0, %v1646_v19 }
 0x225   : > { %v1356_v17 = vadd.f32 %v1348_v53, %v2921_v20  ;;  %v1363_v4 = vmul.f32 0.7978846, %v1355_v55  ;;  %v1168_v29 = vpop.permute.xlu1 %1167  ;;  %v1350_v7 = vmul.f32 0.044715, %v1342_v28  ;;  %v1357_v42 = vadd.f32 %v1349_v24, %v1309_v34  ;;  %v1648_v25 = vpop.eup %1647 }
 0x226   : > { %v1650_v33 = vpop.eup %1649  ;;  %v1383_v36 = vmul.f32 %v1375_v52, %v1319_v23  ;;  %v1236_v57 = vadd.f32 %v1220_v40, %v2826_v41  ;;  %v1234_v56 = vadd.f32 %v1218_v16, %v2819_v44  ;;  %v1378_v53 = vadd.f32 1.0, %v1648_v25 }
 0x227   : > { %1651 = vtanh.f32 %v1363_v4  ;;  %v1358_v58 = vadd.f32 %v1350_v7, %v2933_v48  ;;  %v1365_v26 = vmul.f32 0.7978846, %v1357_v42  ;;  %v1166_v11 = vpop.permute.xlu0 %1165  ;;  %v1364_v14 = vmul.f32 0.7978846, %v1356_v17 }
 0x228   : > { %v1323_v60 = vmul.f32 0.5, %v2916_v1  ;;  %v1376_v28 = vadd.f32 1.0, %v1650_v33  ;;  %v1326_v44 = vmul.f32 0.5, %v2933_v48  ;;  %v1385_v4 = vmul.f32 %v1377_v21, %v1321_v2 }
 0x229   : > { %v1184_v63 = vpop.permute.xlu1 %1183  ;;  %1653 = vtanh.f32 %v1365_v26  ;;  %v1366_v47 = vmul.f32 0.7978846, %v1358_v58  ;;  %v1386_v8 = vmul.f32 %v1378_v53, %v1322_v61 }
 0x22a   : > { %v1203_v9 = vsel %vm1189_vm8, %v1184_v63, %v1168_v29  ;;  %1655 = vtanh.f32 %v1364_v14  ;;  %v1195_v37 = vsel %vm1189_vm8, %v1168_v29, %v1184_v63 }
 0x22b   : > { %v1182_v6 = vpop.permute.xlu0 %1181  ;;  %1657 = vtanh.f32 %v1366_v47  ;;  %v1216_v15 = vmul.f32 %v2837_v13, %v1203_v9  ;;  %v1233_v17 = vadd.f32 %v1195_v37, %v1152_v50 }
 0x22c   : > { %v1202_v27 = vsel %vm1189_vm8, %v1182_v6, %v1166_v11  ;;  %v1194_v43 = vsel %vm1189_vm8, %v1166_v11, %v1182_v6 }
 0x22d   : > { %v1249_v39 = vpop.permute.xlu1 %1248  ;;  %v1214_v59 = vmul.f32 %v2837_v13, %v1202_v27  ;;  %v1232_v35 = vadd.f32 %v1216_v15, %v1151_v10  ;;  %v1324_v13 = vmul.f32 0.5, %v2921_v20  ;;  %v1231_v42 = vadd.f32 %v1194_v43, %v2817_v38 }
 0x22e   : > { %v1384_v27 = vmul.f32 %v1376_v28, %v1320_v22 }
 0x22f   : > { %v1247_v62 = vpop.permute.xlu0 %1246  ;;  %v1230_v1 = vadd.f32 %v1214_v59, %v2814_v51 }
 0x231   : > { %v1652_v55 = vpop.eup %1651  ;;  %v1265_v34 = vpop.permute.xlu1 %1264 }
 0x232   : > { %v1276_v41 = vsel %vm1270_vm10, %v1249_v39, %v1265_v34  ;;  %v1284_v24 = vsel %vm1270_vm10, %v1265_v34, %v1249_v39  ;;  %v1379_v26 = vadd.f32 1.0, %v1652_v55 }
 0x233   : > { %v1298_v29 = vmul.f32 %v2848_v3, %v1284_v24  ;;  %v1313_v54 = vadd.f32 %v1276_v41, %v1232_v35  ;;  %v1654_v7 = vpop.eup %1653  ;;  %v1263_v58 = vpop.permute.xlu0 %1262 }
 0x234   : > { %v1656_v11 = vpop.eup %1655  ;;  %v1275_v20 = vsel %vm1270_vm10, %v1247_v62, %v1263_v58  ;;  %v1283_v48 = vsel %vm1270_vm10, %v1263_v58, %v1247_v62  ;;  %v1381_v38 = vadd.f32 1.0, %v1654_v7 }
 0x235   : > { %v1314_v14 = vadd.f32 %v1298_v29, %v1233_v17  ;;  %v1393_v10 = vmul.f32 %v1385_v4, %v1313_v54  ;;  %v1269_v45 = vpop.permute.xlu1 %1268  ;;  %v1658_v63 = vpop.eup %1657  ;;  %v1296_v50 = vmul.f32 %v2848_v3, %v1283_v48  ;;  %v1311_v9 = vadd.f32 %v1275_v20, %v1230_v1 }
 0x236   : > { %v1278_v51 = vsel %vm1270_vm10, %v2936_v31, %v1269_v45  ;;  %v1286_v47 = vsel %vm1270_vm10, %v1269_v45, %v2936_v31  ;;  %v1380_v52 = vadd.f32 1.0, %v1656_v11  ;;  %v1389_v30 = vmul.f32 %v1381_v38, %v1325_v46 }
 0x237   : > { %v1317_v0 = vadd.f32 %v1278_v51, %v1236_v57  ;;  %v1394_v40 = vmul.f32 %v1386_v8, %v1314_v14  ;;  %v1312_v19 = vadd.f32 %v1296_v50, %v1231_v42  ;;  %v1391_v5 = vmul.f32 %v1383_v36, %v1311_v9  ;;  %v1267_v6 = vpop.permute.xlu0 %1266 }
 0x238   : > { %v1302_v16 = vmul.f32 %v2848_v3, %v1286_v47  ;;  %v1277_v25 = vsel %vm1270_vm10, %v2942_v12, %v1267_v6  ;;  %v1285_v15 = vsel %vm1270_vm10, %v1267_v6, %v2942_v12  ;;  %v1382_v39 = vadd.f32 1.0, %v1658_v63 }
 0x239   : > { %v1401_v31 = vpack.c.bf16 %v1393_v10, %v1391_v5  ;;  %v1397_v33 = vmul.f32 %v1389_v30, %v1317_v0  ;;  %v1300_v2 = vmul.f32 %v2848_v3, %v1285_v15  ;;  %v1315_v61 = vadd.f32 %v1277_v25, %v1234_v56  ;;  %v1642_v3 = vld [vmem:[%s3025_s3] sm:$0xff]  }
 0x23a   : > { %v1318_v23 = vadd.f32 %v1302_v16, %v1237_v49  ;;  %v1387_v46 = vmul.f32 %v1379_v26, %v1323_v60  ;;  %v1392_v21 = vmul.f32 %v1384_v27, %v1312_v19  ;;  %v1390_v36 = vmul.f32 %v1382_v39, %v1326_v44 }
 0x23b   : > { %v1316_v57 = vadd.f32 %v1300_v2, %v1235_v32  ;;  %v1388_v37 = vmul.f32 %v1380_v52, %v1324_v13 }
 0x23c   : > { %v1395_v59 = vmul.f32 %v1387_v46, %v1315_v61  ;;  %v1402_v62 = vpack.c.bf16 %v1394_v40, %v1392_v21  ;;  %v1398_v53 = vmul.f32 %v1390_v36, %v1318_v23 }
 0x23d   : > { %v1396_v55 = vmul.f32 %v1388_v37, %v1316_v57 }
 0x23e   : > { %v1403_v18 = vpack.c.bf16 %v1397_v33, %v1395_v59  ;;  %1426 = vmatprep.subr.bf16.mxu1 %v1402_v62 }
 0x23f   : > { %1427 = vmatpush1.bf16.msra.mxu1 %v1401_v31  ;;  %v1404_v12 = vpack.c.bf16 %v1398_v53, %v1396_v55 }
 0x241   : > { %1428 = vmatprep.subr.bf16.mxu1 %v1404_v12 }
 0x243   : > { %1429 = vmatpush1.bf16.msra.mxu1 %v1403_v18 }
 0x246   : > { %1554 = vmatmul.mubr.msk.bf16.vlgmr.msra.gmra.mrb[4].mxu1 %vm1422_vm11, %v1642_v3  ;;  %v1415_v32 = vpop.permute.xlu1 %1414 }
 0x248   : > { %v1410_v22 = vpop.permute.xlu0 %1409 }
 0x319   : > { %v1460_v49 = vpop.f32.mrb[4].mxu1 }
 0x31a   : > { %v1461_v56 = vadd.f32 %v1460_v49, %v1410_v22  ;;  %v1462_v43 = vpop.f32.mrb[5].mxu1 }
 0x31b   : > { %v1463_v35 = vadd.f32 %v1462_v43, %v1410_v22  ;;  %v1464_v34 = vpop.f32.mrb[6].mxu1 }
 0x31c   : > { %1469 = vst [vmem:[%s224_s13] sm:$0xff] %v1461_v56  ;;  %v1465_v60 = vadd.f32 %v1464_v34, %v1415_v32  ;;  %v1466_v28 = vpop.f32.mrb[7].mxu1 }
 0x31d   : > { %1470 = vst [vmem:[%s224_s13 + $0x8] sm:$0xff] %v1463_v35  ;;  %v1467_v41 = vadd.f32 %v1466_v28, %v1415_v32 }
 0x31e   : > { %1471 = vst [vmem:[%s224_s13 + $0x10] sm:$0xff] %v1465_v60 }
 0x31f   : > { %1472 = vst [vmem:[%s224_s13 + $0x18] sm:$0xff] %v1467_v41 }
 0x320 PF: > { %s15_s18 = sadd.s32 1, %s1665_s18  }
 0x321   : > { %p12_p4 = scmp.ge.s32.totalorder %s15_s18, 4  }
 0x323   :  { %14 = sbr.rel (!%p12_p4) target bundleno = 1 (0x1), region = 70 }

</bundles_post_ra>
